<compile_context>
chip_gen: v6e
topology: v6e:2x2x1
jax: 0.10.0
libtpu: 0.0.40
codegen_flags: <defaults>
</compile_context>

<pallas_src>
import math
from functools import partial

import jax
import jax.numpy as jnp
from jax.experimental import pallas as pl
from jax.experimental.pallas import tpu as pltpu


# ------------------------------ tiling helpers -------------------------------

def _pick_tile(dim, candidates=(512, 256, 128)):
    """Largest MXU/lane-friendly tile that divides `dim`, else the full dim."""
    for t in candidates:
        if dim % t == 0:
            return t
    return dim


def _cparams(n_axes):
    return pltpu.CompilerParams(
        dimension_semantics=("parallel",) * n_axes,
        vmem_limit_bytes=48 * 1024 * 1024,   # fits v7x's 64 MiB physical VMEM
    )


# ------------------------------- Pallas kernels -------------------------------

def _linear_kernel(x_ref, w_ref, b_ref, o_ref, *, act):
    y = jnp.dot(x_ref[...], w_ref[...], preferred_element_type=jnp.float32)
    y = y + b_ref[...]
    if act == "gelu":
        # TODO(synk): torchvision ViT uses exact (erf) GELU; tanh approximation
        # is used because erf lowering in Mosaic is JAX-version dependent.
        y = jax.nn.gelu(y, approximate=True)
    o_ref[...] = y.astype(o_ref.dtype)


def pallas_linear(x, w, b, act=None, out_dtype=jnp.float32):
    """y = act(x @ w + b); bf16 MXU operands, f32 accumulation."""
    M, K = x.shape
    N = w.shape[1]
    tm, tn = _pick_tile(M), _pick_tile(N)
    return pl.pallas_call(
        partial(_linear_kernel, act=act),
        out_shape=jax.ShapeDtypeStruct((M, N), out_dtype),
        grid=(M // tm, N // tn),
        in_specs=[
            pl.BlockSpec((tm, K), lambda i, j: (i, 0)),
            pl.BlockSpec((K, tn), lambda i, j: (0, j)),
            pl.BlockSpec((1, tn), lambda i, j: (0, j)),
        ],
        out_specs=pl.BlockSpec((tm, tn), lambda i, j: (i, j)),
        compiler_params=_cparams(2),
    )(x.astype(jnp.bfloat16), w.astype(jnp.bfloat16),
      b.reshape(1, N).astype(jnp.float32))


def _ln_linear_kernel(x_ref, g_ref, b_ref, w_ref, bias_ref, o_ref, *, eps, act):
    x = x_ref[...]                                        # f32 for LN statistics
    mu = jnp.mean(x, axis=-1, keepdims=True)
    var = jnp.mean(jnp.square(x - mu), axis=-1, keepdims=True)
    h = (x - mu) * jax.lax.rsqrt(var + eps) * g_ref[...] + b_ref[...]
    y = jnp.dot(h.astype(jnp.bfloat16), w_ref[...],
                preferred_element_type=jnp.float32) + bias_ref[...]
    if act == "gelu":
        # TODO(synk): exact erf GELU replaced by tanh approximation (see above).
        y = jax.nn.gelu(y, approximate=True)
    o_ref[...] = y.astype(o_ref.dtype)


def pallas_ln_linear(x, g, b, w, bias, act=None, eps=1e-6, out_dtype=jnp.float32):
    """Fused LayerNorm(x) @ w + bias (+ GELU).  x:(M,K) f32, w:(K,N)."""
    M, K = x.shape
    N = w.shape[1]
    tm, tn = _pick_tile(M), _pick_tile(N)
    return pl.pallas_call(
        partial(_ln_linear_kernel, eps=eps, act=act),
        out_shape=jax.ShapeDtypeStruct((M, N), out_dtype),
        grid=(M // tm, N // tn),
        in_specs=[
            pl.BlockSpec((tm, K), lambda i, j: (i, 0)),
            pl.BlockSpec((1, K), lambda i, j: (0, 0)),
            pl.BlockSpec((1, K), lambda i, j: (0, 0)),
            pl.BlockSpec((K, tn), lambda i, j: (0, j)),
            pl.BlockSpec((1, tn), lambda i, j: (0, j)),
        ],
        out_specs=pl.BlockSpec((tm, tn), lambda i, j: (i, j)),
        compiler_params=_cparams(2),
    )(x, g.reshape(1, K).astype(jnp.float32), b.reshape(1, K).astype(jnp.float32),
      w.astype(jnp.bfloat16), bias.reshape(1, N).astype(jnp.float32))


def _linear_res_kernel(x_ref, w_ref, bias_ref, r_ref, o_ref):
    y = jnp.dot(x_ref[...], w_ref[...], preferred_element_type=jnp.float32)
    o_ref[...] = y + bias_ref[...] + r_ref[...]


def pallas_linear_residual(x, w, bias, res):
    """y = x @ w + bias + res; residual add fused into the projection."""
    M, K = x.shape
    N = w.shape[1]
    tm, tn = _pick_tile(M), _pick_tile(N)
    return pl.pallas_call(
        _linear_res_kernel,
        out_shape=jax.ShapeDtypeStruct((M, N), jnp.float32),
        grid=(M // tm, N // tn),
        in_specs=[
            pl.BlockSpec((tm, K), lambda i, j: (i, 0)),
            pl.BlockSpec((K, tn), lambda i, j: (0, j)),
            pl.BlockSpec((1, tn), lambda i, j: (0, j)),
            pl.BlockSpec((tm, tn), lambda i, j: (i, j)),
        ],
        out_specs=pl.BlockSpec((tm, tn), lambda i, j: (i, j)),
        compiler_params=_cparams(2),
    )(x.astype(jnp.bfloat16), w.astype(jnp.bfloat16),
      bias.reshape(1, N).astype(jnp.float32), res.astype(jnp.float32))


def _attn_kernel(qkv_ref, o_ref, *, n_heads, scale):
    qkv = qkv_ref[0]                       # (T, 3D) bf16, one batch element
    D3 = qkv.shape[-1]
    D = D3 // 3
    dh = D // n_heads
    # contract dh of both operands -> q @ k^T without an in-kernel transpose
    dims_qk = (((1,), (1,)), ((), ()))
    outs = []
    for h in range(n_heads):               # static unroll over heads
        qh = qkv[:, h * dh:(h + 1) * dh] * scale          # pre-scale q (T*dh mults)
        kh = qkv[:, D + h * dh:D + (h + 1) * dh]
        vh = qkv[:, 2 * D + h * dh:2 * D + (h + 1) * dh]
        s = jax.lax.dot_general(qh, kh, dims_qk,
                                preferred_element_type=jnp.float32)  # (T, T) f32
        s = s - jnp.max(s, axis=-1, keepdims=True)
        p = jnp.exp(s)
        p = p * pl.reciprocal(jnp.sum(p, axis=-1, keepdims=True), approx=True)
        outs.append(jnp.dot(p.astype(jnp.bfloat16), vh,
                            preferred_element_type=jnp.float32))
    o_ref[0] = jnp.concatenate(outs, axis=-1).astype(o_ref.dtype)


def pallas_attention(qkv, n_heads):
    """Multi-head softmax attention; all heads of one batch element per grid step.

    qkv: (B, T, 3D) bf16 laid out [q | k | v] along the lane dim, heads contiguous.
    Returns (B, T, D) bf16 with heads already re-merged along the lane dim.
    """
    B, T, D3 = qkv.shape
    D = D3 // 3
    dh = D // n_heads
    scale = 1.0 / math.sqrt(dh)
    return pl.pallas_call(
        partial(_attn_kernel, n_heads=n_heads, scale=scale),
        out_shape=jax.ShapeDtypeStruct((B, T, D), jnp.bfloat16),
        grid=(B,),
        in_specs=[pl.BlockSpec((1, T, D3), lambda i: (i, 0, 0))],
        out_specs=pl.BlockSpec((1, T, D), lambda i: (i, 0, 0)),
        compiler_params=_cparams(1),
    )(qkv)


# --------------------------- parameters (synthetic) ---------------------------

def init_params(key, C, patch, D, n_layers, n_heads, mlp_dim, T, num_classes):
    def nrm(k, shape, s=0.02):
        return s * jax.random.normal(k, shape, dtype=jnp.float32)

    keys = iter(jax.random.split(key, 4 + 4 * n_layers))
    params = {
        "patch_w": nrm(next(keys), (C * patch * patch, D)),
        "patch_b": jnp.zeros((D,), jnp.float32),
        "cls": nrm(next(keys), (1, 1, D)),
        "pos": nrm(next(keys), (1, T, D)),
        "lnf_g": jnp.ones((D,), jnp.float32),
        "lnf_b": jnp.zeros((D,), jnp.float32),
        "head_w": nrm(next(keys), (D, num_classes)),
        "head_b": jnp.zeros((num_classes,), jnp.float32),
        "layers": [],
    }
    for _ in range(n_layers):
        params["layers"].append({
            "ln1_g": jnp.ones((D,), jnp.float32),
            "ln1_b": jnp.zeros((D,), jnp.float32),
            "qkv_w": nrm(next(keys), (D, 3 * D)),
            "qkv_b": jnp.zeros((3 * D,), jnp.float32),
            "out_w": nrm(next(keys), (D, D)),
            "out_b": jnp.zeros((D,), jnp.float32),
            "ln2_g": jnp.ones((D,), jnp.float32),
            "ln2_b": jnp.zeros((D,), jnp.float32),
            "mlp_w1": nrm(next(keys), (D, mlp_dim)),
            "mlp_b1": jnp.zeros((mlp_dim,), jnp.float32),
            "mlp_w2": nrm(next(keys), (mlp_dim, D)),
            "mlp_b2": jnp.zeros((D,), jnp.float32),
        })
    return params


# -------------------------------- ViT forward ---------------------------------

def vit_forward(params, x, *, patch, D, n_heads):
    B, C, H, W = x.shape
    gh, gw = H // patch, W // patch
    n_patches = gh * gw
    T = n_patches + 1

    # Patch embedding == Conv2d(kernel=stride=patch) == matmul over flattened
    # patches; flatten order (C, ph, pw) matches the PyTorch conv weight layout.
    p = x.reshape(B, C, gh, patch, gw, patch)
    p = p.transpose(0, 2, 4, 1, 3, 5).reshape(B * n_patches, C * patch * patch)
    tok = pallas_linear(p, params["patch_w"], params["patch_b"]).reshape(B, n_patches, D)

    cls = jnp.broadcast_to(params["cls"], (B, 1, D))
    tok2d = (jnp.concatenate([cls, tok], axis=1) + params["pos"]).reshape(B * T, D)

    for lp in params["layers"]:
        # --- self-attention block (pre-LN), LN+QKV fused, out-proj+residual fused ---
        qkv = pallas_ln_linear(tok2d, lp["ln1_g"], lp["ln1_b"],
                               lp["qkv_w"], lp["qkv_b"], out_dtype=jnp.bfloat16)
        o = pallas_attention(qkv.reshape(B, T, 3 * D), n_heads)       # (B,T,D) bf16
        tok2d = pallas_linear_residual(o.reshape(B * T, D),
                                       lp["out_w"], lp["out_b"], tok2d)

        # --- MLP block (pre-LN), LN+W1+GELU fused, W2+residual fused ---
        h = pallas_ln_linear(tok2d, lp["ln2_g"], lp["ln2_b"],
                             lp["mlp_w1"], lp["mlp_b1"], act="gelu",
                             out_dtype=jnp.bfloat16)
        tok2d = pallas_linear_residual(h, lp["mlp_w2"], lp["mlp_b2"], tok2d)

    # Final LN + new classification head, applied to the CLS token only
    # (LayerNorm is per-token, so this matches applying it to all tokens first).
    cls_tok = tok2d.reshape(B, T, D)[:, 0]                             # (B, D)
    nc = params["head_w"].shape[1]
    nc_pad = ((nc + 127) // 128) * 128                                 # lane-dense head
    head_w = jnp.zeros((D, nc_pad), jnp.float32).at[:, :nc].set(params["head_w"])
    head_b = jnp.zeros((nc_pad,), jnp.float32).at[:nc].set(params["head_b"])
    logits = pallas_ln_linear(cls_tok, params["lnf_g"], params["lnf_b"],
                              head_w, head_b)
    return logits[:, :nc]                                              # (B, num_classes)


# ------------------------------------ main ------------------------------------

if __name__ == "__main__":
    # Small shapes consistent with a ViT forward (hidden_dim scaled 768 -> 32).
    B, C, H, W = 2, 3, 16, 16
    patch, D, n_heads, mlp_dim, n_layers, num_classes = 4, 32, 4, 64, 2, 10
    T = (H // patch) * (W // patch) + 1

    key = jax.random.PRNGKey(0)
    kx, kp = jax.random.split(key)
    x = jax.random.normal(kx, (B, C, H, W), dtype=jnp.float32)
    params = init_params(kp, C, patch, D, n_layers, n_heads, mlp_dim, T, num_classes)

    fwd = jax.jit(partial(vit_forward, patch=patch, D=D, n_heads=n_heads))
    logits = fwd(params, x)
    jax.block_until_ready(logits)

    assert logits.shape == (B, num_classes)
    assert bool(jnp.all(jnp.isfinite(logits)))
    print("KERNEL_OK")
</pallas_src>

<mosaic_0001>
module attributes {stable_mosaic.version = 11 : i64} {
  func.func @_linear_kernel(%arg0: i32, %arg1: i32, %arg2: memref<32x48xbf16, #tpu.memory_space<vmem>>, %arg3: memref<48x32xbf16, #tpu.memory_space<vmem>>, %arg4: memref<1x32xf32, #tpu.memory_space<vmem>>, %arg5: memref<32x32xf32, #tpu.memory_space<vmem>>) attributes {dimension_semantics = [#tpu.dimension_semantics<parallel>, #tpu.dimension_semantics<parallel>], iteration_bounds = array<i64: 1, 1>, scalar_prefetch = 0 : i64, scratch_operands = 0 : i64, tpu.core_type = #tpu.core_type<tc>, window_params = [{transform_indices = @transform_0, window_bounds = array<i64: 32, 48>}, {transform_indices = @transform_1, window_bounds = array<i64: 48, 32>}, {transform_indices = @transform_2, window_bounds = array<i64: 1, 32>}, {transform_indices = @transform_3, window_bounds = array<i64: 32, 32>}]} {
    %c0 = arith.constant 0 : index
    %c0_0 = arith.constant 0 : index
    %0 = vector.load %arg2[%c0, %c0_0] : memref<32x48xbf16, #tpu.memory_space<vmem>>, vector<32x48xbf16>
    %c0_1 = arith.constant 0 : index
    %c0_2 = arith.constant 0 : index
    %1 = vector.load %arg3[%c0_1, %c0_2] : memref<48x32xbf16, #tpu.memory_space<vmem>>, vector<48x32xbf16>
    %cst = arith.constant dense<0.000000e+00> : vector<32x32xf32>
    %2 = tpu.matmul %0, %1, %cst {dimension_numbers = #tpu.dot_dimension_numbers<[1], [0], [0], [1], [0, 0, 1, 1], [], []>} : vector<32x48xbf16>, vector<48x32xbf16>, vector<32x32xf32> -> vector<32x32xf32>
    %c0_3 = arith.constant 0 : index
    %c0_4 = arith.constant 0 : index
    %3 = vector.load %arg4[%c0_3, %c0_4] : memref<1x32xf32, #tpu.memory_space<vmem>>, vector<1x32xf32>
    %4 = vector.broadcast %3 : vector<1x32xf32> to vector<32x32xf32>
    %5 = arith.addf %2, %4 : vector<32x32xf32>
    %c0_5 = arith.constant 0 : index
    %c0_6 = arith.constant 0 : index
    %6 = vector.load %arg5[%c0_5, %c0_6] : memref<32x32xf32, #tpu.memory_space<vmem>>, vector<32x32xf32>
    tpu.vector_store %arg5[%c0_5, %c0_6], %5 {strides = array<i32>} : memref<32x32xf32, #tpu.memory_space<vmem>>, vector<32x32xf32>,
    return
  }
  func.func @transform_0(%arg0: i32, %arg1: i32) -> (i32, i32) {
    %c0_i32 = arith.constant 0 : i32
    %c0_i32_0 = arith.constant 0 : i32
    return %arg0, %c0_i32 : i32, i32
  }
  func.func @transform_1(%arg0: i32, %arg1: i32) -> (i32, i32) {
    %c0_i32 = arith.constant 0 : i32
    %c0_i32_0 = arith.constant 0 : i32
    return %c0_i32, %arg1 : i32, i32
  }
  func.func @transform_2(%arg0: i32, %arg1: i32) -> (i32, i32) {
    %c0_i32 = arith.constant 0 : i32
    %c0_i32_0 = arith.constant 0 : i32
    return %c0_i32, %arg1 : i32, i32
  }
  func.func @transform_3(%arg0: i32, %arg1: i32) -> (i32, i32) {
    %c0_i32 = arith.constant 0 : i32
    return %arg0, %arg1 : i32, i32
  }
}

module attributes {stable_mosaic.version = 11 : i64} {
  func.func @_ln_linear_kernel(%arg0: i32, %arg1: i32, %arg2: memref<34x32xf32, #tpu.memory_space<vmem>>, %arg3: memref<1x32xf32, #tpu.memory_space<vmem>>, %arg4: memref<1x32xf32, #tpu.memory_space<vmem>>, %arg5: memref<32x96xbf16, #tpu.memory_space<vmem>>, %arg6: memref<1x96xf32, #tpu.memory_space<vmem>>, %arg7: memref<34x96xbf16, #tpu.memory_space<vmem>>) attributes {dimension_semantics = [#tpu.dimension_semantics<parallel>, #tpu.dimension_semantics<parallel>], iteration_bounds = array<i64: 1, 1>, scalar_prefetch = 0 : i64, scratch_operands = 0 : i64, tpu.core_type = #tpu.core_type<tc>, window_params = [{transform_indices = @transform_0, window_bounds = array<i64: 34, 32>}, {pipeline_mode = #tpu.pipeline_mode<synchronous>, transform_indices = @transform_1, window_bounds = array<i64: 1, 32>}, {pipeline_mode = #tpu.pipeline_mode<synchronous>, transform_indices = @transform_2, window_bounds = array<i64: 1, 32>}, {transform_indices = @transform_3, window_bounds = array<i64: 32, 96>}, {transform_indices = @transform_4, window_bounds = array<i64: 1, 96>}, {transform_indices = @transform_5, window_bounds = array<i64: 34, 96>}]} {
    %c0 = arith.constant 0 : index
    %c0_0 = arith.constant 0 : index
    %0 = vector.load %arg2[%c0, %c0_0] : memref<34x32xf32, #tpu.memory_space<vmem>>, vector<34x32xf32>
    %cst = arith.constant dense<0.000000e+00> : vector<34xf32>
    %1 = vector.multi_reduction <add>, %0, %cst [1] : vector<34x32xf32> to vector<34xf32>
    %2 = vector.shape_cast %1 : vector<34xf32> to vector<34x1xf32>
    %cst_1 = arith.constant 3.200000e+01 : f32
    %3 = vector.broadcast %cst_1 : f32 to vector<34x1xf32>
    %4 = arith.divf %2, %3 : vector<34x1xf32>
    %5 = vector.broadcast %4 : vector<34x1xf32> to vector<34x32xf32>
    %6 = arith.subf %0, %5 : vector<34x32xf32>
    %7 = arith.mulf %6, %6 : vector<34x32xf32>
    %cst_2 = arith.constant dense<0.000000e+00> : vector<34xf32>
    %8 = vector.multi_reduction <add>, %7, %cst_2 [1] : vector<34x32xf32> to vector<34xf32>
    %9 = vector.shape_cast %8 : vector<34xf32> to vector<34x1xf32>
    %cst_3 = arith.constant 3.200000e+01 : f32
    %10 = vector.broadcast %cst_3 : f32 to vector<34x1xf32>
    %11 = arith.divf %9, %10 : vector<34x1xf32>
    %12 = vector.broadcast %4 : vector<34x1xf32> to vector<34x32xf32>
    %13 = arith.subf %0, %12 : vector<34x32xf32>
    %cst_4 = arith.constant 9.99999997E-7 : f32
    %14 = vector.broadcast %cst_4 : f32 to vector<34x1xf32>
    %15 = arith.addf %11, %14 : vector<34x1xf32>
    %16 = math.rsqrt %15 : vector<34x1xf32>
    %17 = vector.broadcast %16 : vector<34x1xf32> to vector<34x32xf32>
    %18 = arith.mulf %13, %17 : vector<34x32xf32>
    %c0_5 = arith.constant 0 : index
    %c0_6 = arith.constant 0 : index
    %19 = vector.load %arg3[%c0_5, %c0_6] : memref<1x32xf32, #tpu.memory_space<vmem>>, vector<1x32xf32>
    %20 = vector.broadcast %19 : vector<1x32xf32> to vector<34x32xf32>
    %21 = arith.mulf %18, %20 : vector<34x32xf32>
    %c0_7 = arith.constant 0 : index
    %c0_8 = arith.constant 0 : index
    %22 = vector.load %arg4[%c0_7, %c0_8] : memref<1x32xf32, #tpu.memory_space<vmem>>, vector<1x32xf32>
    %23 = vector.broadcast %22 : vector<1x32xf32> to vector<34x32xf32>
    %24 = arith.addf %21, %23 : vector<34x32xf32>
    %25 = arith.truncf %24 : vector<34x32xf32> to vector<34x32xbf16>
    %c0_9 = arith.constant 0 : index
    %c0_10 = arith.constant 0 : index
    %26 = vector.load %arg5[%c0_9, %c0_10] : memref<32x96xbf16, #tpu.memory_space<vmem>>, vector<32x96xbf16>
    %cst_11 = arith.constant dense<0.000000e+00> : vector<34x96xf32>
    %27 = tpu.matmul %25, %26, %cst_11 {dimension_numbers = #tpu.dot_dimension_numbers<[1], [0], [0], [1], [0, 0, 1, 1], [], []>} : vector<34x32xbf16>, vector<32x96xbf16>, vector<34x96xf32> -> vector<34x96xf32>
    %c0_12 = arith.constant 0 : index
    %c0_13 = arith.constant 0 : index
    %28 = vector.load %arg6[%c0_12, %c0_13] : memref<1x96xf32, #tpu.memory_space<vmem>>, vector<1x96xf32>
    %29 = vector.broadcast %28 : vector<1x96xf32> to vector<34x96xf32>
    %30 = arith.addf %27, %29 : vector<34x96xf32>
    %31 = arith.truncf %30 : vector<34x96xf32> to vector<34x96xbf16>
    %c0_14 = arith.constant 0 : index
    %c0_15 = arith.constant 0 : index
    %32 = vector.load %arg7[%c0_14, %c0_15] : memref<34x96xbf16, #tpu.memory_space<vmem>>, vector<34x96xbf16>
    tpu.vector_store %arg7[%c0_14, %c0_15], %31 {strides = array<i32>} : memref<34x96xbf16, #tpu.memory_space<vmem>>, vector<34x96xbf16>,
    return
  }
  func.func @transform_0(%arg0: i32, %arg1: i32) -> (i32, i32) {
    %c0_i32 = arith.constant 0 : i32
    %c0_i32_0 = arith.constant 0 : i32
    return %arg0, %c0_i32 : i32, i32
  }
  func.func @transform_1(%arg0: i32, %arg1: i32) -> (i32, i32) {
    %c0_i32 = arith.constant 0 : i32
    %c0_i32_0 = arith.constant 0 : i32
    %c0_i32_1 = arith.constant 0 : i32
    return %c0_i32, %c0_i32_0 : i32, i32
  }
  func.func @transform_2(%arg0: i32, %arg1: i32) -> (i32, i32) {
    %c0_i32 = arith.constant 0 : i32
    %c0_i32_0 = arith.constant 0 : i32
    %c0_i32_1 = arith.constant 0 : i32
    return %c0_i32, %c0_i32_0 : i32, i32
  }
  func.func @transform_3(%arg0: i32, %arg1: i32) -> (i32, i32) {
    %c0_i32 = arith.constant 0 : i32
    %c0_i32_0 = arith.constant 0 : i32
    return %c0_i32, %arg1 : i32, i32
  }
  func.func @transform_4(%arg0: i32, %arg1: i32) -> (i32, i32) {
    %c0_i32 = arith.constant 0 : i32
    %c0_i32_0 = arith.constant 0 : i32
    return %c0_i32, %arg1 : i32, i32
  }
  func.func @transform_5(%arg0: i32, %arg1: i32) -> (i32, i32) {
    %c0_i32 = arith.constant 0 : i32
    return %arg0, %arg1 : i32, i32
  }
}

module attributes {stable_mosaic.version = 11 : i64} {
  func.func @_attn_kernel(%arg0: i32, %arg1: memref<1x17x96xbf16, #tpu.memory_space<vmem>>, %arg2: memref<1x17x32xbf16, #tpu.memory_space<vmem>>) attributes {dimension_semantics = [#tpu.dimension_semantics<parallel>], iteration_bounds = array<i64: 2>, scalar_prefetch = 0 : i64, scratch_operands = 0 : i64, tpu.core_type = #tpu.core_type<tc>, window_params = [{transform_indices = @transform_0, window_bounds = array<i64: 1, 17, 96>}, {transform_indices = @transform_1, window_bounds = array<i64: 1, 17, 32>}]} {
    %c0 = arith.constant 0 : index
    %c0_0 = arith.constant 0 : index
    %c0_1 = arith.constant 0 : index
    %0 = vector.load %arg1[%c0, %c0_0, %c0_1] : memref<1x17x96xbf16, #tpu.memory_space<vmem>>, vector<1x17x96xbf16>
    %1 = vector.shape_cast %0 : vector<1x17x96xbf16> to vector<17x96xbf16>
    %2 = vector.extract_strided_slice %1 {offsets = [0, 0], sizes = [17, 8], strides = [1, 1]} : vector<17x96xbf16> to vector<17x8xbf16>
    %cst = arith.constant 3.535160e-01 : bf16
    %3 = vector.broadcast %cst : bf16 to vector<17x8xbf16>
    %4 = arith.mulf %2, %3 : vector<17x8xbf16>
    %5 = vector.extract_strided_slice %1 {offsets = [0, 32], sizes = [17, 8], strides = [1, 1]} : vector<17x96xbf16> to vector<17x8xbf16>
    %6 = vector.extract_strided_slice %1 {offsets = [0, 64], sizes = [17, 8], strides = [1, 1]} : vector<17x96xbf16> to vector<17x8xbf16>
    %cst_2 = arith.constant dense<0.000000e+00> : vector<17x17xf32>
    %7 = tpu.matmul %4, %5, %cst_2 {dimension_numbers = #tpu.dot_dimension_numbers<[1], [1], [0], [0], [0, 0, 1, 0], [], []>} : vector<17x8xbf16>, vector<17x8xbf16>, vector<17x17xf32> -> vector<17x17xf32>
    %cst_3 = arith.constant dense<0xFF800000> : vector<17xf32>
    %8 = vector.multi_reduction <maximumf>, %7, %cst_3 [1] : vector<17x17xf32> to vector<17xf32>
    %9 = vector.shape_cast %8 : vector<17xf32> to vector<17x1xf32>
    %10 = vector.broadcast %9 : vector<17x1xf32> to vector<17x17xf32>
    %11 = arith.subf %7, %10 : vector<17x17xf32>
    %12 = math.exp %11 : vector<17x17xf32>
    %cst_4 = arith.constant dense<0.000000e+00> : vector<17xf32>
    %13 = vector.multi_reduction <add>, %12, %cst_4 [1] : vector<17x17xf32> to vector<17xf32>
    %14 = vector.shape_cast %13 : vector<17xf32> to vector<17x1xf32>
    %15 = tpu.reciprocal %14 {approx = true} : vector<17x1xf32> -> vector<17x1xf32>
    %16 = vector.broadcast %15 : vector<17x1xf32> to vector<17x17xf32>
    %17 = arith.mulf %12, %16 : vector<17x17xf32>
    %18 = arith.truncf %17 : vector<17x17xf32> to vector<17x17xbf16>
    %cst_5 = arith.constant dense<0.000000e+00> : vector<17x8xf32>
    %19 = tpu.matmul %18, %6, %cst_5 {dimension_numbers = #tpu.dot_dimension_numbers<[1], [0], [0], [1], [0, 0, 1, 1], [], []>} : vector<17x17xbf16>, vector<17x8xbf16>, vector<17x8xf32> -> vector<17x8xf32>
    %20 = vector.extract_strided_slice %1 {offsets = [0, 8], sizes = [17, 8], strides = [1, 1]} : vector<17x96xbf16> to vector<17x8xbf16>
    %cst_6 = arith.constant 3.535160e-01 : bf16
    %21 = vector.broadcast %cst_6 : bf16 to vector<17x8xbf16>
    %22 = arith.mulf %20, %21 : vector<17x8xbf16>
    %23 = vector.extract_strided_slice %1 {offsets = [0, 40], sizes = [17, 8], strides = [1, 1]} : vector<17x96xbf16> to vector<17x8xbf16>
    %24 = vector.extract_strided_slice %1 {offsets = [0, 72], sizes = [17, 8], strides = [1, 1]} : vector<17x96xbf16> to vector<17x8xbf16>
    %cst_7 = arith.constant dense<0.000000e+00> : vector<17x17xf32>
    %25 = tpu.matmul %22, %23, %cst_7 {dimension_numbers = #tpu.dot_dimension_numbers<[1], [1], [0], [0], [0, 0, 1, 0], [], []>} : vector<17x8xbf16>, vector<17x8xbf16>, vector<17x17xf32> -> vector<17x17xf32>
    %cst_8 = arith.constant dense<0xFF800000> : vector<17xf32>
    %26 = vector.multi_reduction <maximumf>, %25, %cst_8 [1] : vector<17x17xf32> to vector<17xf32>
    %27 = vector.shape_cast %26 : vector<17xf32> to vector<17x1xf32>
    %28 = vector.broadcast %27 : vector<17x1xf32> to vector<17x17xf32>
    %29 = arith.subf %25, %28 : vector<17x17xf32>
    %30 = math.exp %29 : vector<17x17xf32>
    %cst_9 = arith.constant dense<0.000000e+00> : vector<17xf32>
    %31 = vector.multi_reduction <add>, %30, %cst_9 [1] : vector<17x17xf32> to vector<17xf32>
    %32 = vector.shape_cast %31 : vector<17xf32> to vector<17x1xf32>
    %33 = tpu.reciprocal %32 {approx = true} : vector<17x1xf32> -> vector<17x1xf32>
    %34 = vector.broadcast %33 : vector<17x1xf32> to vector<17x17xf32>
    %35 = arith.mulf %30, %34 : vector<17x17xf32>
    %36 = arith.truncf %35 : vector<17x17xf32> to vector<17x17xbf16>
    %cst_10 = arith.constant dense<0.000000e+00> : vector<17x8xf32>
    %37 = tpu.matmul %36, %24, %cst_10 {dimension_numbers = #tpu.dot_dimension_numbers<[1], [0], [0], [1], [0, 0, 1, 1], [], []>} : vector<17x17xbf16>, vector<17x8xbf16>, vector<17x8xf32> -> vector<17x8xf32>
    %38 = vector.extract_strided_slice %1 {offsets = [0, 16], sizes = [17, 8], strides = [1, 1]} : vector<17x96xbf16> to vector<17x8xbf16>
    %cst_11 = arith.constant 3.535160e-01 : bf16
    %39 = vector.broadcast %cst_11 : bf16 to vector<17x8xbf16>
    %40 = arith.mulf %38, %39 : vector<17x8xbf16>
    %41 = vector.extract_strided_slice %1 {offsets = [0, 48], sizes = [17, 8], strides = [1, 1]} : vector<17x96xbf16> to vector<17x8xbf16>
    %42 = vector.extract_strided_slice %1 {offsets = [0, 80], sizes = [17, 8], strides = [1, 1]} : vector<17x96xbf16> to vector<17x8xbf16>
    %cst_12 = arith.constant dense<0.000000e+00> : vector<17x17xf32>
    %43 = tpu.matmul %40, %41, %cst_12 {dimension_numbers = #tpu.dot_dimension_numbers<[1], [1], [0], [0], [0, 0, 1, 0], [], []>} : vector<17x8xbf16>, vector<17x8xbf16>, vector<17x17xf32> -> vector<17x17xf32>
    %cst_13 = arith.constant dense<0xFF800000> : vector<17xf32>
    %44 = vector.multi_reduction <maximumf>, %43, %cst_13 [1] : vector<17x17xf32> to vector<17xf32>
    %45 = vector.shape_cast %44 : vector<17xf32> to vector<17x1xf32>
    %46 = vector.broadcast %45 : vector<17x1xf32> to vector<17x17xf32>
    %47 = arith.subf %43, %46 : vector<17x17xf32>
    %48 = math.exp %47 : vector<17x17xf32>
    %cst_14 = arith.constant dense<0.000000e+00> : vector<17xf32>
    %49 = vector.multi_reduction <add>, %48, %cst_14 [1] : vector<17x17xf32> to vector<17xf32>
    %50 = vector.shape_cast %49 : vector<17xf32> to vector<17x1xf32>
    %51 = tpu.reciprocal %50 {approx = true} : vector<17x1xf32> -> vector<17x1xf32>
    %52 = vector.broadcast %51 : vector<17x1xf32> to vector<17x17xf32>
    %53 = arith.mulf %48, %52 : vector<17x17xf32>
    %54 = arith.truncf %53 : vector<17x17xf32> to vector<17x17xbf16>
    %cst_15 = arith.constant dense<0.000000e+00> : vector<17x8xf32>
    %55 = tpu.matmul %54, %42, %cst_15 {dimension_numbers = #tpu.dot_dimension_numbers<[1], [0], [0], [1], [0, 0, 1, 1], [], []>} : vector<17x17xbf16>, vector<17x8xbf16>, vector<17x8xf32> -> vector<17x8xf32>
    %56 = vector.extract_strided_slice %1 {offsets = [0, 24], sizes = [17, 8], strides = [1, 1]} : vector<17x96xbf16> to vector<17x8xbf16>
    %cst_16 = arith.constant 3.535160e-01 : bf16
    %57 = vector.broadcast %cst_16 : bf16 to vector<17x8xbf16>
    %58 = arith.mulf %56, %57 : vector<17x8xbf16>
    %59 = vector.extract_strided_slice %1 {offsets = [0, 56], sizes = [17, 8], strides = [1, 1]} : vector<17x96xbf16> to vector<17x8xbf16>
    %60 = vector.extract_strided_slice %1 {offsets = [0, 88], sizes = [17, 8], strides = [1, 1]} : vector<17x96xbf16> to vector<17x8xbf16>
    %cst_17 = arith.constant dense<0.000000e+00> : vector<17x17xf32>
    %61 = tpu.matmul %58, %59, %cst_17 {dimension_numbers = #tpu.dot_dimension_numbers<[1], [1], [0], [0], [0, 0, 1, 0], [], []>} : vector<17x8xbf16>, vector<17x8xbf16>, vector<17x17xf32> -> vector<17x17xf32>
    %cst_18 = arith.constant dense<0xFF800000> : vector<17xf32>
    %62 = vector.multi_reduction <maximumf>, %61, %cst_18 [1] : vector<17x17xf32> to vector<17xf32>
    %63 = vector.shape_cast %62 : vector<17xf32> to vector<17x1xf32>
    %64 = vector.broadcast %63 : vector<17x1xf32> to vector<17x17xf32>
    %65 = arith.subf %61, %64 : vector<17x17xf32>
    %66 = math.exp %65 : vector<17x17xf32>
    %cst_19 = arith.constant dense<0.000000e+00> : vector<17xf32>
    %67 = vector.multi_reduction <add>, %66, %cst_19 [1] : vector<17x17xf32> to vector<17xf32>
    %68 = vector.shape_cast %67 : vector<17xf32> to vector<17x1xf32>
    %69 = tpu.reciprocal %68 {approx = true} : vector<17x1xf32> -> vector<17x1xf32>
    %70 = vector.broadcast %69 : vector<17x1xf32> to vector<17x17xf32>
    %71 = arith.mulf %66, %70 : vector<17x17xf32>
    %72 = arith.truncf %71 : vector<17x17xf32> to vector<17x17xbf16>
    %cst_20 = arith.constant dense<0.000000e+00> : vector<17x8xf32>
    %73 = tpu.matmul %72, %60, %cst_20 {dimension_numbers = #tpu.dot_dimension_numbers<[1], [0], [0], [1], [0, 0, 1, 1], [], []>} : vector<17x17xbf16>, vector<17x8xbf16>, vector<17x8xf32> -> vector<17x8xf32>
    %74 = tpu.concatenate %19, %37, %55, %73 in 1 : vector<17x8xf32>, vector<17x8xf32>, vector<17x8xf32>, vector<17x8xf32> -> vector<17x32xf32>
    %75 = arith.truncf %74 : vector<17x32xf32> to vector<17x32xbf16>
    %c0_21 = arith.constant 0 : index
    %c0_22 = arith.constant 0 : index
    %c0_23 = arith.constant 0 : index
    %76 = vector.load %arg2[%c0_21, %c0_22, %c0_23] : memref<1x17x32xbf16, #tpu.memory_space<vmem>>, vector<1x17x32xbf16>
    %77 = vector.shape_cast %76 : vector<1x17x32xbf16> to vector<17x32xbf16>
    %78 = vector.shape_cast %75 : vector<17x32xbf16> to vector<1x17x32xbf16>
    tpu.vector_store %arg2[%c0_21, %c0_22, %c0_23], %78 {strides = array<i32>} : memref<1x17x32xbf16, #tpu.memory_space<vmem>>, vector<1x17x32xbf16>,
    return
  }
  func.func @transform_0(%arg0: i32) -> (i32, i32, i32) {
    %c0_i32 = arith.constant 0 : i32
    %c0_i32_0 = arith.constant 0 : i32
    %c0_i32_1 = arith.constant 0 : i32
    return %arg0, %c0_i32, %c0_i32_0 : i32, i32, i32
  }
  func.func @transform_1(%arg0: i32) -> (i32, i32, i32) {
    %c0_i32 = arith.constant 0 : i32
    %c0_i32_0 = arith.constant 0 : i32
    %c0_i32_1 = arith.constant 0 : i32
    return %arg0, %c0_i32, %c0_i32_0 : i32, i32, i32
  }
}

module attributes {stable_mosaic.version = 11 : i64} {
  func.func @_linear_res_kernel(%arg0: i32, %arg1: i32, %arg2: memref<34x32xbf16, #tpu.memory_space<vmem>>, %arg3: memref<32x32xbf16, #tpu.memory_space<vmem>>, %arg4: memref<1x32xf32, #tpu.memory_space<vmem>>, %arg5: memref<34x32xf32, #tpu.memory_space<vmem>>, %arg6: memref<34x32xf32, #tpu.memory_space<vmem>>) attributes {dimension_semantics = [#tpu.dimension_semantics<parallel>, #tpu.dimension_semantics<parallel>], iteration_bounds = array<i64: 1, 1>, scalar_prefetch = 0 : i64, scratch_operands = 0 : i64, tpu.core_type = #tpu.core_type<tc>, window_params = [{transform_indices = @transform_0, window_bounds = array<i64: 34, 32>}, {transform_indices = @transform_1, window_bounds = array<i64: 32, 32>}, {transform_indices = @transform_2, window_bounds = array<i64: 1, 32>}, {transform_indices = @transform_3, window_bounds = array<i64: 34, 32>}, {transform_indices = @transform_4, window_bounds = array<i64: 34, 32>}]} {
    %c0 = arith.constant 0 : index
    %c0_0 = arith.constant 0 : index
    %0 = vector.load %arg2[%c0, %c0_0] : memref<34x32xbf16, #tpu.memory_space<vmem>>, vector<34x32xbf16>
    %c0_1 = arith.constant 0 : index
    %c0_2 = arith.constant 0 : index
    %1 = vector.load %arg3[%c0_1, %c0_2] : memref<32x32xbf16, #tpu.memory_space<vmem>>, vector<32x32xbf16>
    %cst = arith.constant dense<0.000000e+00> : vector<34x32xf32>
    %2 = tpu.matmul %0, %1, %cst {dimension_numbers = #tpu.dot_dimension_numbers<[1], [0], [0], [1], [0, 0, 1, 1], [], []>} : vector<34x32xbf16>, vector<32x32xbf16>, vector<34x32xf32> -> vector<34x32xf32>
    %c0_3 = arith.constant 0 : index
    %c0_4 = arith.constant 0 : index
    %3 = vector.load %arg4[%c0_3, %c0_4] : memref<1x32xf32, #tpu.memory_space<vmem>>, vector<1x32xf32>
    %4 = vector.broadcast %3 : vector<1x32xf32> to vector<34x32xf32>
    %5 = arith.addf %2, %4 : vector<34x32xf32>
    %c0_5 = arith.constant 0 : index
    %c0_6 = arith.constant 0 : index
    %6 = vector.load %arg5[%c0_5, %c0_6] : memref<34x32xf32, #tpu.memory_space<vmem>>, vector<34x32xf32>
    %7 = arith.addf %5, %6 : vector<34x32xf32>
    %c0_7 = arith.constant 0 : index
    %c0_8 = arith.constant 0 : index
    %8 = vector.load %arg6[%c0_7, %c0_8] : memref<34x32xf32, #tpu.memory_space<vmem>>, vector<34x32xf32>
    tpu.vector_store %arg6[%c0_7, %c0_8], %7 {strides = array<i32>} : memref<34x32xf32, #tpu.memory_space<vmem>>, vector<34x32xf32>,
    return
  }
  func.func @transform_0(%arg0: i32, %arg1: i32) -> (i32, i32) {
    %c0_i32 = arith.constant 0 : i32
    %c0_i32_0 = arith.constant 0 : i32
    return %arg0, %c0_i32 : i32, i32
  }
  func.func @transform_1(%arg0: i32, %arg1: i32) -> (i32, i32) {
    %c0_i32 = arith.constant 0 : i32
    %c0_i32_0 = arith.constant 0 : i32
    return %c0_i32, %arg1 : i32, i32
  }
  func.func @transform_2(%arg0: i32, %arg1: i32) -> (i32, i32) {
    %c0_i32 = arith.constant 0 : i32
    %c0_i32_0 = arith.constant 0 : i32
    return %c0_i32, %arg1 : i32, i32
  }
  func.func @transform_3(%arg0: i32, %arg1: i32) -> (i32, i32) {
    %c0_i32 = arith.constant 0 : i32
    return %arg0, %arg1 : i32, i32
  }
  func.func @transform_4(%arg0: i32, %arg1: i32) -> (i32, i32) {
    %c0_i32 = arith.constant 0 : i32
    return %arg0, %arg1 : i32, i32
  }
}

module attributes {stable_mosaic.version = 11 : i64} {
  func.func @_linear_res_kernel(%arg0: i32, %arg1: i32, %arg2: memref<34x64xbf16, #tpu.memory_space<vmem>>, %arg3: memref<64x32xbf16, #tpu.memory_space<vmem>>, %arg4: memref<1x32xf32, #tpu.memory_space<vmem>>, %arg5: memref<34x32xf32, #tpu.memory_space<vmem>>, %arg6: memref<34x32xf32, #tpu.memory_space<vmem>>) attributes {dimension_semantics = [#tpu.dimension_semantics<parallel>, #tpu.dimension_semantics<parallel>], iteration_bounds = array<i64: 1, 1>, scalar_prefetch = 0 : i64, scratch_operands = 0 : i64, tpu.core_type = #tpu.core_type<tc>, window_params = [{transform_indices = @transform_0, window_bounds = array<i64: 34, 64>}, {transform_indices = @transform_1, window_bounds = array<i64: 64, 32>}, {transform_indices = @transform_2, window_bounds = array<i64: 1, 32>}, {transform_indices = @transform_3, window_bounds = array<i64: 34, 32>}, {transform_indices = @transform_4, window_bounds = array<i64: 34, 32>}]} {
    %c0 = arith.constant 0 : index
    %c0_0 = arith.constant 0 : index
    %0 = vector.load %arg2[%c0, %c0_0] : memref<34x64xbf16, #tpu.memory_space<vmem>>, vector<34x64xbf16>
    %c0_1 = arith.constant 0 : index
    %c0_2 = arith.constant 0 : index
    %1 = vector.load %arg3[%c0_1, %c0_2] : memref<64x32xbf16, #tpu.memory_space<vmem>>, vector<64x32xbf16>
    %cst = arith.constant dense<0.000000e+00> : vector<34x32xf32>
    %2 = tpu.matmul %0, %1, %cst {dimension_numbers = #tpu.dot_dimension_numbers<[1], [0], [0], [1], [0, 0, 1, 1], [], []>} : vector<34x64xbf16>, vector<64x32xbf16>, vector<34x32xf32> -> vector<34x32xf32>
    %c0_3 = arith.constant 0 : index
    %c0_4 = arith.constant 0 : index
    %3 = vector.load %arg4[%c0_3, %c0_4] : memref<1x32xf32, #tpu.memory_space<vmem>>, vector<1x32xf32>
    %4 = vector.broadcast %3 : vector<1x32xf32> to vector<34x32xf32>
    %5 = arith.addf %2, %4 : vector<34x32xf32>
    %c0_5 = arith.constant 0 : index
    %c0_6 = arith.constant 0 : index
    %6 = vector.load %arg5[%c0_5, %c0_6] : memref<34x32xf32, #tpu.memory_space<vmem>>, vector<34x32xf32>
    %7 = arith.addf %5, %6 : vector<34x32xf32>
    %c0_7 = arith.constant 0 : index
    %c0_8 = arith.constant 0 : index
    %8 = vector.load %arg6[%c0_7, %c0_8] : memref<34x32xf32, #tpu.memory_space<vmem>>, vector<34x32xf32>
    tpu.vector_store %arg6[%c0_7, %c0_8], %7 {strides = array<i32>} : memref<34x32xf32, #tpu.memory_space<vmem>>, vector<34x32xf32>,
    return
  }
  func.func @transform_0(%arg0: i32, %arg1: i32) -> (i32, i32) {
    %c0_i32 = arith.constant 0 : i32
    %c0_i32_0 = arith.constant 0 : i32
    return %arg0, %c0_i32 : i32, i32
  }
  func.func @transform_1(%arg0: i32, %arg1: i32) -> (i32, i32) {
    %c0_i32 = arith.constant 0 : i32
    %c0_i32_0 = arith.constant 0 : i32
    return %c0_i32, %arg1 : i32, i32
  }
  func.func @transform_2(%arg0: i32, %arg1: i32) -> (i32, i32) {
    %c0_i32 = arith.constant 0 : i32
    %c0_i32_0 = arith.constant 0 : i32
    return %c0_i32, %arg1 : i32, i32
  }
  func.func @transform_3(%arg0: i32, %arg1: i32) -> (i32, i32) {
    %c0_i32 = arith.constant 0 : i32
    return %arg0, %arg1 : i32, i32
  }
  func.func @transform_4(%arg0: i32, %arg1: i32) -> (i32, i32) {
    %c0_i32 = arith.constant 0 : i32
    return %arg0, %arg1 : i32, i32
  }
}

module attributes {stable_mosaic.version = 11 : i64} {
  func.func @_ln_linear_kernel(%arg0: i32, %arg1: i32, %arg2: memref<34x32xf32, #tpu.memory_space<vmem>>, %arg3: memref<1x32xf32, #tpu.memory_space<vmem>>, %arg4: memref<1x32xf32, #tpu.memory_space<vmem>>, %arg5: memref<32x64xbf16, #tpu.memory_space<vmem>>, %arg6: memref<1x64xf32, #tpu.memory_space<vmem>>, %arg7: memref<34x64xbf16, #tpu.memory_space<vmem>>) attributes {dimension_semantics = [#tpu.dimension_semantics<parallel>, #tpu.dimension_semantics<parallel>], iteration_bounds = array<i64: 1, 1>, scalar_prefetch = 0 : i64, scratch_operands = 0 : i64, tpu.core_type = #tpu.core_type<tc>, window_params = [{transform_indices = @transform_0, window_bounds = array<i64: 34, 32>}, {pipeline_mode = #tpu.pipeline_mode<synchronous>, transform_indices = @transform_1, window_bounds = array<i64: 1, 32>}, {pipeline_mode = #tpu.pipeline_mode<synchronous>, transform_indices = @transform_2, window_bounds = array<i64: 1, 32>}, {transform_indices = @transform_3, window_bounds = array<i64: 32, 64>}, {transform_indices = @transform_4, window_bounds = array<i64: 1, 64>}, {transform_indices = @transform_5, window_bounds = array<i64: 34, 64>}]} {
    %c0 = arith.constant 0 : index
    %c0_0 = arith.constant 0 : index
    %0 = vector.load %arg2[%c0, %c0_0] : memref<34x32xf32, #tpu.memory_space<vmem>>, vector<34x32xf32>
    %cst = arith.constant dense<0.000000e+00> : vector<34xf32>
    %1 = vector.multi_reduction <add>, %0, %cst [1] : vector<34x32xf32> to vector<34xf32>
    %2 = vector.shape_cast %1 : vector<34xf32> to vector<34x1xf32>
    %cst_1 = arith.constant 3.200000e+01 : f32
    %3 = vector.broadcast %cst_1 : f32 to vector<34x1xf32>
    %4 = arith.divf %2, %3 : vector<34x1xf32>
    %5 = vector.broadcast %4 : vector<34x1xf32> to vector<34x32xf32>
    %6 = arith.subf %0, %5 : vector<34x32xf32>
    %7 = arith.mulf %6, %6 : vector<34x32xf32>
    %cst_2 = arith.constant dense<0.000000e+00> : vector<34xf32>
    %8 = vector.multi_reduction <add>, %7, %cst_2 [1] : vector<34x32xf32> to vector<34xf32>
    %9 = vector.shape_cast %8 : vector<34xf32> to vector<34x1xf32>
    %cst_3 = arith.constant 3.200000e+01 : f32
    %10 = vector.broadcast %cst_3 : f32 to vector<34x1xf32>
    %11 = arith.divf %9, %10 : vector<34x1xf32>
    %12 = vector.broadcast %4 : vector<34x1xf32> to vector<34x32xf32>
    %13 = arith.subf %0, %12 : vector<34x32xf32>
    %cst_4 = arith.constant 9.99999997E-7 : f32
    %14 = vector.broadcast %cst_4 : f32 to vector<34x1xf32>
    %15 = arith.addf %11, %14 : vector<34x1xf32>
    %16 = math.rsqrt %15 : vector<34x1xf32>
    %17 = vector.broadcast %16 : vector<34x1xf32> to vector<34x32xf32>
    %18 = arith.mulf %13, %17 : vector<34x32xf32>
    %c0_5 = arith.constant 0 : index
    %c0_6 = arith.constant 0 : index
    %19 = vector.load %arg3[%c0_5, %c0_6] : memref<1x32xf32, #tpu.memory_space<vmem>>, vector<1x32xf32>
    %20 = vector.broadcast %19 : vector<1x32xf32> to vector<34x32xf32>
    %21 = arith.mulf %18, %20 : vector<34x32xf32>
    %c0_7 = arith.constant 0 : index
    %c0_8 = arith.constant 0 : index
    %22 = vector.load %arg4[%c0_7, %c0_8] : memref<1x32xf32, #tpu.memory_space<vmem>>, vector<1x32xf32>
    %23 = vector.broadcast %22 : vector<1x32xf32> to vector<34x32xf32>
    %24 = arith.addf %21, %23 : vector<34x32xf32>
    %25 = arith.truncf %24 : vector<34x32xf32> to vector<34x32xbf16>
    %c0_9 = arith.constant 0 : index
    %c0_10 = arith.constant 0 : index
    %26 = vector.load %arg5[%c0_9, %c0_10] : memref<32x64xbf16, #tpu.memory_space<vmem>>, vector<32x64xbf16>
    %cst_11 = arith.constant dense<0.000000e+00> : vector<34x64xf32>
    %27 = tpu.matmul %25, %26, %cst_11 {dimension_numbers = #tpu.dot_dimension_numbers<[1], [0], [0], [1], [0, 0, 1, 1], [], []>} : vector<34x32xbf16>, vector<32x64xbf16>, vector<34x64xf32> -> vector<34x64xf32>
    %c0_12 = arith.constant 0 : index
    %c0_13 = arith.constant 0 : index
    %28 = vector.load %arg6[%c0_12, %c0_13] : memref<1x64xf32, #tpu.memory_space<vmem>>, vector<1x64xf32>
    %29 = vector.broadcast %28 : vector<1x64xf32> to vector<34x64xf32>
    %30 = arith.addf %27, %29 : vector<34x64xf32>
    %31 = arith.mulf %30, %30 : vector<34x64xf32>
    %32 = arith.mulf %30, %31 : vector<34x64xf32>
    %cst_14 = arith.constant 4.471500e-02 : f32
    %33 = vector.broadcast %cst_14 : f32 to vector<34x64xf32>
    %34 = arith.mulf %33, %32 : vector<34x64xf32>
    %35 = arith.addf %30, %34 : vector<34x64xf32>
    %cst_15 = arith.constant 0.797884583 : f32
    %36 = vector.broadcast %cst_15 : f32 to vector<34x64xf32>
    %37 = arith.mulf %36, %35 : vector<34x64xf32>
    %38 = math.tanh %37 : vector<34x64xf32>
    %cst_16 = arith.constant 1.000000e+00 : f32
    %39 = vector.broadcast %cst_16 : f32 to vector<34x64xf32>
    %40 = arith.addf %39, %38 : vector<34x64xf32>
    %cst_17 = arith.constant 5.000000e-01 : f32
    %41 = vector.broadcast %cst_17 : f32 to vector<34x64xf32>
    %42 = arith.mulf %41, %40 : vector<34x64xf32>
    %43 = arith.mulf %30, %42 : vector<34x64xf32>
    %44 = arith.truncf %43 : vector<34x64xf32> to vector<34x64xbf16>
    %c0_18 = arith.constant 0 : index
    %c0_19 = arith.constant 0 : index
    %45 = vector.load %arg7[%c0_18, %c0_19] : memref<34x64xbf16, #tpu.memory_space<vmem>>, vector<34x64xbf16>
    tpu.vector_store %arg7[%c0_18, %c0_19], %44 {strides = array<i32>} : memref<34x64xbf16, #tpu.memory_space<vmem>>, vector<34x64xbf16>,
    return
  }
  func.func @transform_0(%arg0: i32, %arg1: i32) -> (i32, i32) {
    %c0_i32 = arith.constant 0 : i32
    %c0_i32_0 = arith.constant 0 : i32
    return %arg0, %c0_i32 : i32, i32
  }
  func.func @transform_1(%arg0: i32, %arg1: i32) -> (i32, i32) {
    %c0_i32 = arith.constant 0 : i32
    %c0_i32_0 = arith.constant 0 : i32
    %c0_i32_1 = arith.constant 0 : i32
    return %c0_i32, %c0_i32_0 : i32, i32
  }
  func.func @transform_2(%arg0: i32, %arg1: i32) -> (i32, i32) {
    %c0_i32 = arith.constant 0 : i32
    %c0_i32_0 = arith.constant 0 : i32
    %c0_i32_1 = arith.constant 0 : i32
    return %c0_i32, %c0_i32_0 : i32, i32
  }
  func.func @transform_3(%arg0: i32, %arg1: i32) -> (i32, i32) {
    %c0_i32 = arith.constant 0 : i32
    %c0_i32_0 = arith.constant 0 : i32
    return %c0_i32, %arg1 : i32, i32
  }
  func.func @transform_4(%arg0: i32, %arg1: i32) -> (i32, i32) {
    %c0_i32 = arith.constant 0 : i32
    %c0_i32_0 = arith.constant 0 : i32
    return %c0_i32, %arg1 : i32, i32
  }
  func.func @transform_5(%arg0: i32, %arg1: i32) -> (i32, i32) {
    %c0_i32 = arith.constant 0 : i32
    return %arg0, %arg1 : i32, i32
  }
}

module attributes {stable_mosaic.version = 11 : i64} {
  func.func @_ln_linear_kernel(%arg0: i32, %arg1: i32, %arg2: memref<2x32xf32, #tpu.memory_space<vmem>>, %arg3: memref<1x32xf32, #tpu.memory_space<vmem>>, %arg4: memref<1x32xf32, #tpu.memory_space<vmem>>, %arg5: memref<32x128xbf16, #tpu.memory_space<vmem>>, %arg6: memref<1x128xf32, #tpu.memory_space<vmem>>, %arg7: memref<2x128xf32, #tpu.memory_space<vmem>>) attributes {dimension_semantics = [#tpu.dimension_semantics<parallel>, #tpu.dimension_semantics<parallel>], iteration_bounds = array<i64: 1, 1>, scalar_prefetch = 0 : i64, scratch_operands = 0 : i64, tpu.core_type = #tpu.core_type<tc>, window_params = [{transform_indices = @transform_0, window_bounds = array<i64: 2, 32>}, {pipeline_mode = #tpu.pipeline_mode<synchronous>, transform_indices = @transform_1, window_bounds = array<i64: 1, 32>}, {pipeline_mode = #tpu.pipeline_mode<synchronous>, transform_indices = @transform_2, window_bounds = array<i64: 1, 32>}, {transform_indices = @transform_3, window_bounds = array<i64: 32, 128>}, {transform_indices = @transform_4, window_bounds = array<i64: 1, 128>}, {transform_indices = @transform_5, window_bounds = array<i64: 2, 128>}]} {
    %c0 = arith.constant 0 : index
    %c0_0 = arith.constant 0 : index
    %0 = vector.load %arg2[%c0, %c0_0] : memref<2x32xf32, #tpu.memory_space<vmem>>, vector<2x32xf32>
    %cst = arith.constant dense<0.000000e+00> : vector<2xf32>
    %1 = vector.multi_reduction <add>, %0, %cst [1] : vector<2x32xf32> to vector<2xf32>
    %2 = vector.shape_cast %1 : vector<2xf32> to vector<2x1xf32>
    %cst_1 = arith.constant 3.200000e+01 : f32
    %3 = vector.broadcast %cst_1 : f32 to vector<2x1xf32>
    %4 = arith.divf %2, %3 : vector<2x1xf32>
    %5 = vector.broadcast %4 : vector<2x1xf32> to vector<2x32xf32>
    %6 = arith.subf %0, %5 : vector<2x32xf32>
    %7 = arith.mulf %6, %6 : vector<2x32xf32>
    %cst_2 = arith.constant dense<0.000000e+00> : vector<2xf32>
    %8 = vector.multi_reduction <add>, %7, %cst_2 [1] : vector<2x32xf32> to vector<2xf32>
    %9 = vector.shape_cast %8 : vector<2xf32> to vector<2x1xf32>
    %cst_3 = arith.constant 3.200000e+01 : f32
    %10 = vector.broadcast %cst_3 : f32 to vector<2x1xf32>
    %11 = arith.divf %9, %10 : vector<2x1xf32>
    %12 = vector.broadcast %4 : vector<2x1xf32> to vector<2x32xf32>
    %13 = arith.subf %0, %12 : vector<2x32xf32>
    %cst_4 = arith.constant 9.99999997E-7 : f32
    %14 = vector.broadcast %cst_4 : f32 to vector<2x1xf32>
    %15 = arith.addf %11, %14 : vector<2x1xf32>
    %16 = math.rsqrt %15 : vector<2x1xf32>
    %17 = vector.broadcast %16 : vector<2x1xf32> to vector<2x32xf32>
    %18 = arith.mulf %13, %17 : vector<2x32xf32>
    %c0_5 = arith.constant 0 : index
    %c0_6 = arith.constant 0 : index
    %19 = vector.load %arg3[%c0_5, %c0_6] : memref<1x32xf32, #tpu.memory_space<vmem>>, vector<1x32xf32>
    %20 = vector.broadcast %19 : vector<1x32xf32> to vector<2x32xf32>
    %21 = arith.mulf %18, %20 : vector<2x32xf32>
    %c0_7 = arith.constant 0 : index
    %c0_8 = arith.constant 0 : index
    %22 = vector.load %arg4[%c0_7, %c0_8] : memref<1x32xf32, #tpu.memory_space<vmem>>, vector<1x32xf32>
    %23 = vector.broadcast %22 : vector<1x32xf32> to vector<2x32xf32>
    %24 = arith.addf %21, %23 : vector<2x32xf32>
    %25 = arith.truncf %24 : vector<2x32xf32> to vector<2x32xbf16>
    %c0_9 = arith.constant 0 : index
    %c0_10 = arith.constant 0 : index
    %26 = vector.load %arg5[%c0_9, %c0_10] : memref<32x128xbf16, #tpu.memory_space<vmem>>, vector<32x128xbf16>
    %cst_11 = arith.constant dense<0.000000e+00> : vector<2x128xf32>
    %27 = tpu.matmul %25, %26, %cst_11 {dimension_numbers = #tpu.dot_dimension_numbers<[1], [0], [0], [1], [0, 0, 1, 1], [], []>} : vector<2x32xbf16>, vector<32x128xbf16>, vector<2x128xf32> -> vector<2x128xf32>
    %c0_12 = arith.constant 0 : index
    %c0_13 = arith.constant 0 : index
    %28 = vector.load %arg6[%c0_12, %c0_13] : memref<1x128xf32, #tpu.memory_space<vmem>>, vector<1x128xf32>
    %29 = vector.broadcast %28 : vector<1x128xf32> to vector<2x128xf32>
    %30 = arith.addf %27, %29 : vector<2x128xf32>
    %c0_14 = arith.constant 0 : index
    %c0_15 = arith.constant 0 : index
    %31 = vector.load %arg7[%c0_14, %c0_15] : memref<2x128xf32, #tpu.memory_space<vmem>>, vector<2x128xf32>
    tpu.vector_store %arg7[%c0_14, %c0_15], %30 {strides = array<i32>} : memref<2x128xf32, #tpu.memory_space<vmem>>, vector<2x128xf32>,
    return
  }
  func.func @transform_0(%arg0: i32, %arg1: i32) -> (i32, i32) {
    %c0_i32 = arith.constant 0 : i32
    %c0_i32_0 = arith.constant 0 : i32
    return %arg0, %c0_i32 : i32, i32
  }
  func.func @transform_1(%arg0: i32, %arg1: i32) -> (i32, i32) {
    %c0_i32 = arith.constant 0 : i32
    %c0_i32_0 = arith.constant 0 : i32
    %c0_i32_1 = arith.constant 0 : i32
    return %c0_i32, %c0_i32_0 : i32, i32
  }
  func.func @transform_2(%arg0: i32, %arg1: i32) -> (i32, i32) {
    %c0_i32 = arith.constant 0 : i32
    %c0_i32_0 = arith.constant 0 : i32
    %c0_i32_1 = arith.constant 0 : i32
    return %c0_i32, %c0_i32_0 : i32, i32
  }
  func.func @transform_3(%arg0: i32, %arg1: i32) -> (i32, i32) {
    %c0_i32 = arith.constant 0 : i32
    %c0_i32_0 = arith.constant 0 : i32
    return %c0_i32, %arg1 : i32, i32
  }
  func.func @transform_4(%arg0: i32, %arg1: i32) -> (i32, i32) {
    %c0_i32 = arith.constant 0 : i32
    %c0_i32_0 = arith.constant 0 : i32
    return %c0_i32, %arg1 : i32, i32
  }
  func.func @transform_5(%arg0: i32, %arg1: i32) -> (i32, i32) {
    %c0_i32 = arith.constant 0 : i32
    return %arg0, %arg1 : i32, i32
  }
}

</mosaic_0001>

<bundles_post_ra>
// kernel: vit_forward.12
= control target key start
LH: loop header
LB: loop body
LE: loop exit
PB: predicated region body
PF: predicated region fallthrough
CT: control target
= control target key end

     0   :  { %vm60_vm0 = vcmask 392192   ;;  %vm116_vm1 = vcmask 261120   ;;  %s203_s1 = inlined_call_operand.vmem [shape: bf16[48,32], index: 1, kind: input, shape index: {}]   ;;  %s204_s0 = inlined_call_operand.vmem [shape: bf16[32,48], index: 0, kind: input, shape index: {}]   ;;  %s205_s2 = inlined_call_operand.vmem [shape: f32[1,32], index: 2, kind: input, shape index: {}]   ;;  %s206_s3 = inlined_call_operand.vmem [shape: f32[32,32], index: 3, kind: output, shape index: {}]  }
   0x1   :  { %v148_v0 = vld [vmem:[%s203_s1 + $0x10] sm:$0xff]   ;;  %v149_v1 = vld [vmem:[%s203_s1 + $0x8] sm:$0xff]   ;;  %v151_v2 = vld [vmem:[%s204_s0] sm:$0xff]  }
   0x2   :  { %138 = vmatprep.subr.bf16.mxu0 %v148_v0  ;;  %v150_v3 = vld [vmem:[%s203_s1] sm:$0xff]   ;;  %144 = vmatprep.mubr.msk.bf16.mxu0 %vm60_vm0, %v151_v2  ;;  %v152_v4 = vld [vmem:[%s204_s0 + $0x8] sm:$0xff]  }
   0x3   :  { %139 = vmatpush3.bf16.msra.mxu0 %v148_v0  ;;  %v125_v5 = vld [vmem:[%s205_s2] ss:$0 sm:$0xff] }
   0x4   :  { %140 = vmatprep.subr.bf16.mxu0 %v149_v1 }
   0x7   :  { %141 = vmatpush3.bf16.msra.mxu0 %v149_v1 }
   0x8   :  { %142 = vmatprep.subr.bf16.mxu0 %v150_v3 }
   0xb   :  { %143 = vmatpush3.bf16.msra.mxu0 %v150_v3 }
   0xe   :  { %145 = vmatmul.mubr.msk.bf16.vlgmr.msra.gmra.mxu0 %vm60_vm0, %v152_v4 }
  0xce   :  { %v146_v6 = vpop.f32.mrf.mxu0 }
  0xcf   :  { %v110_v7 = vadd.f32 %v146_v6, %v125_v5 }
  0xd0   :  { %v101_v8 = vpop.f32.mrf.mxu0 }
  0xd1   :  { %119 = vst.msk [vmem:[%s206_s3 + $0x10] sm:$0xff] %vm116_vm1, %v110_v7  ;;  %v102_v9 = vadd.f32 %v125_v5, %v101_v8 }
  0xd2   :  { %v147_v10 = vpop.f32.mrf.mxu0 }
  0xd3   :  { %117 = vst.msk [vmem:[%s206_s3] sm:$0xff] %vm116_vm1, %v102_v9  ;;  %v113_v11 = vadd.f32 %v147_v10, %v125_v5 }
  0xd4   :  { %v104_v12 = vpop.f32.mrf.mxu0 }
  0xd5   :  { %120 = vst.msk [vmem:[%s206_s3 + $0x18] sm:$0xff] %vm116_vm1, %v113_v11  ;;  %v105_v13 = vadd.f32 %v125_v5, %v104_v12 }
  0xd7   :  { %118 = vst.msk [vmem:[%s206_s3 + $0x8] sm:$0xff] %vm116_vm1, %v105_v13 }

// kernel: vit_forward.13
= control target key start
LH: loop header
LB: loop body
LE: loop exit
PB: predicated region body
PF: predicated region fallthrough
CT: control target
= control target key end

     0   :  { %vm26_vm0 = vcmask 261120   ;;  %vm39_vm1 = vcmask 254976   ;;  %v298_v35 = vmov 0.0   ;;  %vm299_vm2 = vmmov 0   ;;  %s410_s0 = inlined_call_operand.vmem [shape: f32[34,32], index: 0, kind: input, shape index: {}]   ;;  %s411_s3 = inlined_call_operand.vmem [shape: bf16[32,96], index: 3, kind: input, shape index: {}]   ;;  %s412_s1 = inlined_call_operand.vmem [shape: f32[1,32], index: 1, kind: input, shape index: {}]   ;;  %s413_s2 = inlined_call_operand.vmem [shape: f32[1,32], index: 2, kind: input, shape index: {}]   ;;  %s414_s4 = inlined_call_operand.vmem [shape: f32[1,96], index: 4, kind: input, shape index: {}]   ;;  %s415_s5 = inlined_call_operand.vmem [shape: bf16[34,96], index: 5, kind: output, shape index: {}]  }
   0x1   :  { %v23_v0 = vld [vmem:[%s410_s0 + $0x10] sm:$0xff]  ;;  %v24_v1 = vld [vmem:[%s410_s0 + $0x18] sm:$0xff]  ;;  %v21_v2 = vld [vmem:[%s410_s0] sm:$0xff]  ;;  %280 = vmatprep.subr.bf16.mxu1 %v298_v35  ;;  %264 = vmatprep.subr.bf16.mxu0 %v298_v35  ;;  %vm230_vm3 = vcmask 781312   ;;  %vm235_vm4 = vcmask 778240  }
   0x2   :  { %v33_v3 = vsel %vm26_vm0, %v23_v0, 0.0  ;;  %v27_v4 = vsel %vm26_vm0, %v21_v2, 0.0  ;;  %v22_v5 = vld [vmem:[%s410_s0 + $0x8] sm:$0xff]  ;;  %v36_v6 = vsel %vm26_vm0, %v24_v1, 0.0  ;;  %v25_v8 = vld [vmem:[%s410_s0 + $0x20] sm:$0x3]  ;;  %272 = vmatprep.mubr.msk.bf16.mxu1 %vm299_vm2, %v298_v35  ;;  %268 = vmatprep.mubr.msk.bf16.mxu0 %vm299_vm2, %v298_v35 }
   0x3   :  { %34 = vadd.xlane.f32.xlu0 %v33_v3  ;;  %28 = vadd.xlane.f32.xlu1 %v27_v4  ;;  %v30_v7 = vsel %vm26_vm0, %v22_v5, 0.0  ;;  %v40_v9 = vsel %vm39_vm1, %v25_v8, 0.0  ;;  %v286_v36 = vld [vmem:[%s411_s3 + $0x8] sm:$0xff]   ;;  %v287_v37 = vld [vmem:[%s411_s3] sm:$0xff]  }
   0x4   :  { %282 = vmatpush3.bf16.msra.mxu1 %v286_v36  ;;  %265 = vmatpush3.bf16.msra.mxu0 %v286_v36  ;;  %v241_v55 = vld [vmem:[%s412_s1] ss:$0 sm:$0xff] }
   0x5   :  { %281 = vmatprep.subr.bf16.mxu1 %v298_v35  ;;  %266 = vmatprep.subr.bf16.mxu0 %v298_v35  ;;  %v242_v60 = vld [vmem:[%s413_s2] ss:$0 sm:$0xff] }
   0x7   :  { %37 = vadd.xlane.f32.xlu0 %v36_v6  ;;  %31 = vadd.xlane.f32.xlu1 %v30_v7 }
   0x8   :  { %283 = vmatpush3.bf16.msra.mxu1 %v287_v37  ;;  %267 = vmatpush3.bf16.msra.mxu0 %v287_v37 }
   0xb   :  { %41 = vadd.xlane.f32.xlu0 %v40_v9 }
  0x8c   :  { %v35_v10 = vpop.xlane.xlu0 %34  ;;  %v29_v11 = vpop.xlane.xlu1 %28 }
  0x8d   :  { %v46_v12 = vmul.f32 0.03125, %v35_v10  ;;  %v44_v13 = vmul.f32 0.03125, %v29_v11 }
  0x8f   :  { %v350_v14 = vsub.f32 %v23_v0, %v46_v12  ;;  %v352_v15 = vsub.f32 %v21_v2, %v44_v13 }
  0x90   :  { %v38_v16 = vpop.xlane.xlu0 %37  ;;  %v32_v17 = vpop.xlane.xlu1 %31 }
  0x91   :  { %v47_v18 = vmul.f32 0.03125, %v38_v16  ;;  %v56_v19 = vmul.f32 %v350_v14, %v350_v14  ;;  %v45_v20 = vmul.f32 0.03125, %v32_v17  ;;  %v54_v21 = vmul.f32 %v352_v15, %v352_v15 }
  0x93   :  { %v52_v22 = vsub.f32 %v24_v1, %v47_v18  ;;  %v65_v23 = vsel %vm26_vm0, %v56_v19, 0.0  ;;  %v359_v24 = vsub.f32 %v22_v5, %v45_v20  ;;  %v59_v28 = vsel %vm26_vm0, %v54_v21, 0.0 }
  0x94   :  { %v42_v25 = vpop.xlane.xlu0 %41  ;;  %66 = vadd.xlane.f32.xlu1 %v65_v23 }
  0x95   :  { %v48_v26 = vmul.f32 0.03125, %v42_v25  ;;  %v57_v27 = vmul.f32 %v52_v22, %v52_v22  ;;  %v55_v29 = vmul.f32 %v359_v24, %v359_v24 }
  0x97   :  { %v53_v30 = vsub.f32 %v25_v8, %v48_v26  ;;  %v68_v31 = vsel %vm26_vm0, %v57_v27, 0.0  ;;  %v62_v33 = vsel %vm26_vm0, %v55_v29, 0.0 }
  0x98   :  { %69 = vadd.xlane.f32.xlu0 %v68_v31  ;;  %60 = vadd.xlane.f32.xlu1 %v59_v28 }
  0x99   :  { %v58_v32 = vmul.f32 %v53_v30, %v53_v30 }
  0x9b   :  { %v71_v34 = vsel %vm39_vm1, %v58_v32, 0.0 }
  0x9c   :  { %72 = vadd.xlane.f32.xlu1 %v71_v34  ;;  %63 = vadd.xlane.f32.xlu0 %v62_v33 }
 0x11d   :  { %v67_v38 = vpop.xlane.xlu1 %66 }
 0x11e   :  { %v76_v39 = vmul.f32 0.03125, %v67_v38 }
 0x120   :  { %v81_v40 = vadd.f32 1e-06, %v76_v39 }
 0x121   :  { %v70_v41 = vpop.xlane.xlu0 %69  ;;  %v61_v42 = vpop.xlane.xlu1 %60 }
 0x122   :  { %288 = vrsqrt.f32 %v81_v40  ;;  %v77_v43 = vmul.f32 0.03125, %v70_v41  ;;  %v74_v44 = vmul.f32 0.03125, %v61_v42 }
 0x124   :  { %v82_v45 = vadd.f32 1e-06, %v77_v43  ;;  %v79_v46 = vadd.f32 1e-06, %v74_v44 }
 0x125   :  { %v64_v47 = vpop.xlane.xlu0 %63  ;;  %v73_v48 = vpop.xlane.xlu1 %72 }
 0x126   :  { %290 = vrsqrt.f32 %v82_v45  ;;  %v75_v49 = vmul.f32 0.03125, %v64_v47  ;;  %v78_v50 = vmul.f32 0.03125, %v73_v48 }
 0x127   :  { %292 = vrsqrt.f32 %v79_v46 }
 0x128   :  { %v80_v51 = vadd.f32 1e-06, %v75_v49  ;;  %v83_v52 = vadd.f32 1e-06, %v78_v50 }
 0x12a   :  { %294 = vrsqrt.f32 %v80_v51 }
 0x12b   :  { %296 = vrsqrt.f32 %v83_v52 }
 0x12f   :  { %v289_v53 = vpop.eup %288 }
 0x130   :  { %v91_v54 = vmul.f32 %v289_v53, %v350_v14  ;;  %v243_v14 = vld [vmem:[%s414_s4] ss:$0 sm:$0xff] }
 0x132   :  { %v103_v59 = vmul.f32 %v241_v55, %v91_v54 }
 0x133   :  { %v291_v56 = vpop.eup %290 }
 0x134   :  { %v293_v57 = vpop.eup %292  ;;  %v92_v58 = vmul.f32 %v291_v56, %v52_v22  ;;  %v115_v1 = vadd.f32 %v242_v60, %v103_v59 }
 0x135   :  { %v89_v61 = vmul.f32 %v293_v57, %v352_v15 }
 0x136   :  { %v104_v62 = vmul.f32 %v241_v55, %v92_v58 }
 0x137   :  { %v295_v63 = vpop.eup %294  ;;  %v101_v4 = vmul.f32 %v241_v55, %v89_v61 }
 0x138   :  { %v297_v0 = vpop.eup %296  ;;  %v116_v2 = vadd.f32 %v242_v60, %v104_v62  ;;  %v90_v3 = vmul.f32 %v295_v63, %v359_v24 }
 0x139   :  { %v93_v5 = vmul.f32 %v297_v0, %v53_v30  ;;  %v113_v9 = vadd.f32 %v242_v60, %v101_v4 }
 0x13a   :  { %v119_v6 = vpack.c.bf16 %v116_v2, %v115_v1  ;;  %v102_v7 = vmul.f32 %v241_v55, %v90_v3 }
 0x13b   :  { %v105_v8 = vmul.f32 %v241_v55, %v93_v5 }
 0x13c   :  { %273 = vmatmul.mubr.msk.bf16.vlgmr.msra.gmra.mxu1 %vm26_vm0, %v119_v6  ;;  %v114_v10 = vadd.f32 %v242_v60, %v102_v7 }
 0x13d   :  { %276 = vmatprep.mubr.msk.bf16.mxu1 %vm299_vm2, %v298_v35  ;;  %v117_v12 = vadd.f32 %v242_v60, %v105_v8 }
 0x13e   :  { %v118_v11 = vpack.c.bf16 %v114_v10, %v113_v9 }
 0x13f   :  { %v120_v13 = vpack.c.bf16 %v117_v12, %v117_v12 }
 0x140   :  { %269 = vmatmul.mubr.msk.bf16.vlgmr.msra.gmra.mxu0 %vm26_vm0, %v118_v11 }
 0x144   :  { %277 = vmatmul.mubr.msk.bf16.gmra.mxu1 %vm26_vm0, %v120_v13 }
 0x1fc   :  { %v195_v15 = vpop.f32.mrf.mxu1 }
 0x1fd   :  { %v196_v16 = vadd.f32 %v243_v14, %v195_v15 }
 0x1fe   :  { %v274_v17 = vpop.f32.mrf.mxu1 }
 0x1ff   :  { %v256_v18 = vpack.c.bf16 %v196_v16, %v196_v16 }
 0x200   :  { %v187_v19 = vpop.f32.mrf.mxu0  ;;  %v198_v20 = vpop.f32.mrf.mxu1 }
 0x201   :  { %233 = vst.msk [vmem:[%s415_s5 + $0x8] sm:$0xf] %vm230_vm3, %v256_v18  ;;  %v188_v21 = vadd.f32 %v243_v14, %v187_v19  ;;  %v199_v22 = vadd.f32 %v243_v14, %v198_v20 }
 0x202   :  { %v270_v23 = vpop.f32.mrf.mxu0  ;;  %v275_v24 = vpop.f32.mrf.mxu1 }
 0x203   :  { %v254_v25 = vpack.c.bf16 %v188_v21, %v188_v21  ;;  %v257_v26 = vpack.c.bf16 %v199_v22, %v199_v22 }
 0x204   :  { %v190_v27 = vpop.f32.mrf.mxu0  ;;  %v203_v28 = vpop.f32.mrf.mxu1 }
 0x205   :  { %231 = vst.msk [vmem:[%s415_s5] sm:$0xf] %vm230_vm3, %v254_v25  ;;  %234 = vst.msk [vmem:[%s415_s5 + $0xc] sm:$0xf] %vm230_vm3, %v257_v26  ;;  %v191_v29 = vadd.f32 %v243_v14, %v190_v27  ;;  %v204_v30 = vadd.f32 %v243_v14, %v203_v28 }
 0x206   :  { %v271_v31 = vpop.f32.mrf.mxu0  ;;  %v278_v32 = vpop.f32.mrf.mxu1 }
 0x207   :  { %v255_v33 = vpack.c.bf16 %v191_v29, %v191_v29  ;;  %v258_v34 = vpack.c.bf16 %v204_v30, %v204_v30 }
 0x208   :  { %v206_v35 = vpop.f32.mrf.mxu1 }
 0x209   :  { %232 = vst.msk [vmem:[%s415_s5 + $0x4] sm:$0xf] %vm230_vm3, %v255_v33 }
 0x20a   :  { %236 = vst.msk [vmem:[%s415_s5 + $0x10] sm:$0x1] %vm235_vm4, %v258_v34  ;;  %v279_v36 = vpop.f32.mrf.mxu1 }

// kernel: vit_forward.15
= control target key start
LH: loop header
LB: loop body
LE: loop exit
PB: predicated region body
PF: predicated region fallthrough
CT: control target
= control target key end

     0   :  { %v186_v0 = vmov 0.0   ;;  %vm187_vm0 = vmmov 0   ;;  %vm59_vm1 = vcmask 261120   ;;  %vm139_vm2 = vcmask 254976   ;;  %s271_s1 = inlined_call_operand.vmem [shape: bf16[32,32], index: 1, kind: input, shape index: {}]   ;;  %s272_s0 = inlined_call_operand.vmem [shape: bf16[34,32], index: 0, kind: input, shape index: {}]   ;;  %s273_s2 = inlined_call_operand.vmem [shape: f32[1,32], index: 2, kind: input, shape index: {}]   ;;  %s274_s3 = inlined_call_operand.vmem [shape: f32[34,32], index: 3, kind: input, shape index: {}]   ;;  %s275_s4 = inlined_call_operand.vmem [shape: f32[34,32], index: 4, kind: output, shape index: {}]  }
   0x1   :  { %159 = vmatprep.subr.bf16.mxu0 %v186_v0  ;;  %175 = vmatprep.subr.bf16.mxu1 %v186_v0  ;;  %v181_v1 = vld [vmem:[%s271_s1 + $0x8] sm:$0xff]   ;;  %v182_v2 = vld [vmem:[%s271_s1] sm:$0xff]   ;;  %v185_v5 = vld [vmem:[%s272_s0 + $0x10] ss:$0 sps:$4 sm:$0x11]  }
   0x2   :  { %163 = vmatprep.mubr.msk.bf16.mxu0 %vm187_vm0, %v186_v0  ;;  %167 = vmatprep.mubr.msk.bf16.mxu1 %vm187_vm0, %v186_v0  ;;  %v183_v3 = vld [vmem:[%s272_s0] sm:$0xff]   ;;  %v184_v4 = vld [vmem:[%s272_s0 + $0x8] sm:$0xff]   ;;  %v127_v10 = vld [vmem:[%s274_s3 + $0x10] sm:$0xff] }
   0x3   :  { %160 = vmatpush3.bf16.msra.mxu0 %v181_v1  ;;  %177 = vmatpush3.bf16.msra.mxu1 %v181_v1  ;;  %v145_v6 = vld [vmem:[%s273_s2] ss:$0 sm:$0xff]  ;;  %v126_v18 = vld [vmem:[%s274_s3 + $0x8] sm:$0xff]  ;;  %v128_v20 = vld [vmem:[%s274_s3 + $0x18] sm:$0xff] }
   0x4   :  { %161 = vmatprep.subr.bf16.mxu0 %v186_v0  ;;  %176 = vmatprep.subr.bf16.mxu1 %v186_v0  ;;  %v125_v8 = vld [vmem:[%s274_s3] sm:$0xff] }
   0x5   :  { %v129_v28 = vld [vmem:[%s274_s3 + $0x20] sm:$0x3] }
   0x7   :  { %162 = vmatpush3.bf16.msra.mxu0 %v182_v2  ;;  %178 = vmatpush3.bf16.msra.mxu1 %v182_v2 }
   0xa   :  { %164 = vmatmul.mubr.msk.bf16.vlgmr.msra.gmra.mxu0 %vm59_vm1, %v183_v3  ;;  %168 = vmatmul.mubr.msk.bf16.vlgmr.msra.gmra.mxu1 %vm59_vm1, %v184_v4 }
   0xb   :  { %171 = vmatprep.mubr.msk.bf16.mxu1 %vm187_vm0, %v186_v0 }
  0x12   :  { %172 = vmatmul.mubr.msk.bf16.gmra.mxu1 %vm59_vm1, %v185_v5 }
  0xca   :  { %v103_v7 = vpop.f32.mrf.mxu0  ;;  %v111_v9 = vpop.f32.mrf.mxu1 }
  0xcb   :  { %v104_v11 = vadd.f32 %v145_v6, %v103_v7  ;;  %v112_v12 = vadd.f32 %v145_v6, %v111_v9 }
  0xcc   :  { %v165_v13 = vpop.f32.mrf.mxu0  ;;  %v169_v14 = vpop.f32.mrf.mxu1 }
  0xcd   :  { %v130_v15 = vadd.f32 %v125_v8, %v104_v11  ;;  %v132_v16 = vadd.f32 %v127_v10, %v112_v12 }
  0xce   :  { %v106_v17 = vpop.f32.mrf.mxu0  ;;  %v114_v19 = vpop.f32.mrf.mxu1 }
  0xcf   :  { %135 = vst.msk [vmem:[%s275_s4] sm:$0xff] %vm59_vm1, %v130_v15  ;;  %137 = vst.msk [vmem:[%s275_s4 + $0x10] sm:$0xff] %vm59_vm1, %v132_v16  ;;  %v107_v21 = vadd.f32 %v145_v6, %v106_v17  ;;  %v115_v22 = vadd.f32 %v145_v6, %v114_v19 }
  0xd0   :  { %v166_v23 = vpop.f32.mrf.mxu0  ;;  %v170_v24 = vpop.f32.mrf.mxu1 }
  0xd1   :  { %v131_v25 = vadd.f32 %v126_v18, %v107_v21  ;;  %v133_v26 = vadd.f32 %v128_v20, %v115_v22 }
  0xd2   :  { %v119_v27 = vpop.f32.mrf.mxu1 }
  0xd3   :  { %136 = vst.msk [vmem:[%s275_s4 + $0x8] sm:$0xff] %vm59_vm1, %v131_v25  ;;  %138 = vst.msk [vmem:[%s275_s4 + $0x18] sm:$0xff] %vm59_vm1, %v133_v26  ;;  %v120_v29 = vadd.f32 %v145_v6, %v119_v27 }
  0xd4   :  { %v173_v30 = vpop.f32.mrf.mxu1 }
  0xd5   :  { %v134_v31 = vadd.f32 %v129_v28, %v120_v29 }
  0xd6   :  { %v122_v32 = vpop.f32.mrf.mxu1 }
  0xd7   :  { %140 = vst.msk [vmem:[%s275_s4 + $0x20] sm:$0x3] %vm139_vm2, %v134_v31 }
  0xd8   :  { %v174_v33 = vpop.f32.mrf.mxu1 }

// kernel: vit_forward.14
= control target key start
LH: loop header
LB: loop body
LE: loop exit
PB: predicated region body
PF: predicated region fallthrough
CT: control target
= control target key end

     0   :  { %s1188_s6 = smov 0   ;;  %s1341_s0 = inlined_call_operand.vmem [shape: bf16[2,17,96], index: 0, kind: input, shape index: {}]   ;;  %s1342_s1 = inlined_call_operand.vmem [shape: bf16[2,17,32], index: 1, kind: output, shape index: {}]  }
   0x1 LB: > { %s927_s7 = sadd.s32 4294967295, %s1161_s6   ;;  %p931_p0 = scmp.ge.s32.totalorder %s1161_s6, 1  ;;  %s1161_s6 = sphi %s1188_s6, %s11_s6  }
   0x2   : > { %p87_p1 = scmp.lt.s32.totalorder %s1161_s6, 3 }
   0x4   : > { %p88_p2 = pnand %p931_p0, %p87_p1 }
   0x5   : > { %p107_p3 = scmp.lt.s32.totalorder (!%p88_p2), %s927_s7, 1  ;;  %s1163_s12 = smov (!%p88_p2), 96  }
   0x6   : > { %91 = sbr.rel (%p88_p2) target bundleno = 2586 (0xa1a), region = 24  ;;  %s1164_s13 = smov (!%p88_p2), 64  }
   0x7   : > { %s1165_s14 = smov (!%p88_p2), 88   ;;  %s1167_s15 = smov (!%p88_p2), 120  }
   0x8   : > { %s1168_s16 = smov (!%p88_p2), 56   ;;  %s1169_s17 = smov (!%p88_p2), 80  }
   0x9   : > { %s1170_s18 = smov (!%p88_p2), 112   ;;  %s1171_s19 = smov (!%p88_p2), 48  }
   0xa   : > { %s1172_s20 = smov (!%p88_p2), 72   ;;  %s1173_s21 = smov (!%p88_p2), 104  }
   0xb   : > { %s1344_s7 = smov (!%p107_p3, %s927_s7), 1  ;;  %vm145_vm0 = vcmask 64512   ;;  %vm213_vm1 = vcmask 131072   ;;  %vm206_vm2 = vcmask 138240   ;;  %vm254_vm3 = vcmask 1040384   ;;  %s1174_s22 = smov 40  }
   0xc   : > { %s1066_s8 = smul.u32 12, %s1344_s7  ;;  %v1166_v29 = vmov 0   ;;  %s1175_s23 = smov 8   ;;  %vm842_vm4 = vcmask 130048   ;;  %vm846_vm5 = vcmask 195584   ;;  %vm866_vm6 = vcmask 253952  }
   0xd   : > { %v1229_v30 = vsel %vm254_vm3, 65535, %v1166_v29  ;;  %s1176_s24 = smov 16   ;;  %s1177_s25 = smov 24   ;;  %vm867_vm7 = vsmask.f32 256  ;;  %vm863_vm8 = vcmask 257024  }
   0xe   : > { %s111_s11 = scalar_lea.vmem %s1341_s0, %s1066_s8  ;;  %s116_s28 = scalar_lea.vmem %s1342_s1, %s1066_s8  ;;  %vm868_vm9 = vmand %vm866_vm6, %vm867_vm7 }
   0xf   : > { %v121_v0 = vld [vmem:[%s111_s11 + $0x8] sm:$0x1]  ;;  %v119_v1 = vld [vmem:[%s111_s11] sm:$0xf]  ;;  %v120_v2 = vld [vmem:[%s111_s11 + $0x4] sm:$0xf] }
  0x10   : > { %v1204_v3 = vcombine.low %v121_v0, %v121_v0  ;;  %v122_v4 = vmul.bf16 1052065461, %v119_v1  ;;  %v123_v5 = vmul.bf16 1052065461, %v120_v2  ;;  %v1207_v6 = vcombine.low %v119_v1, %v120_v2 }
  0x11   : > { %v124_v12 = vmul.bf16 1052065461, %v121_v0 }
  0x12   : > { %143 = vrot.lane.b32.xlu0 %v1204_v3, %s1163_s12  ;;  %v1209_v7 = vcombine.low %v122_v4, %v123_v5 }
  0x13   : > { %v1218_v13 = vcombine.low %v124_v12, %v124_v12 }
  0x14   : > { %998 = vmatprep.mubr.msk.bf16.mxu0 %vm145_vm0, %v1209_v7 }
  0x16   : > { %141 = vrot.lane.b32.xlu0 %v1207_v6, %s1163_s12 }
  0x84   : > { %v144_v8 = vpop.permute.xlu0 %143 }
  0x85   : > { %1058 = vmatprep.subr.msk.bf16.mxu0 %vm145_vm0, %v144_v8  ;;  %v156_v9 = vsel %vm145_vm0, %v144_v8, 0 }
  0x86   : > { %995 = vmatpush3.bf16.xpose.msra.mxu0 %v156_v9 }
  0x88   : > { %v142_v10 = vpop.permute.xlu0 %141 }
  0x89   : > { %1059 = vmatprep.subr.msk.bf16.mxu0 %vm145_vm0, %v142_v10  ;;  %v153_v11 = vsel %vm145_vm0, %v142_v10, 0 }
  0x8e   : > { %997 = vmatpush3.bf16.xpose.msra.mxu0 %v153_v11 }
  0x95   : > { %999 = vmatmul.mubr.msk.bf16.vlgmr.msra.gmra.mxu0 %vm145_vm0, %v1218_v13 }
 0x155   : > { %v1000_v14 = vpop.f32.mrf.mxu0 }
 0x156   : > { %v214_v15 = vsel %vm213_vm1, %v1000_v14, -inf }
 0x157   : > { %215 = vmax.xlane.f32.xlu0 %v214_v15  ;;  %v192_v16 = vpop.f32.mrf.mxu0 }
 0x158   : > { %v207_v17 = vsel %vm206_vm2, %v192_v16, -inf }
 0x159   : > { %208 = vmax.xlane.f32.xlu1 %v207_v17  ;;  %v1001_v18 = vpop.f32.mrf.mxu0 }
 0x15b   : > { %v195_v19 = vpop.f32.mrf.mxu0 }
 0x15c   : > { %v210_v20 = vsel %vm206_vm2, %v195_v19, -inf }
 0x15d   : > { %211 = vmax.xlane.f32.xlu1 %v210_v20 }
 0x16d   : > { %314 = vrot.lane.b32.xlu0 %v1204_v3, %s1165_s14 }
 0x16e   : > { %245 = vrot.lane.b32.xlu1 %v1204_v3, %s1164_s13 }
 0x1e0   : > { %v216_v21 = vpop.xlane.xlu0 %215 }
 0x1e1   : > { %v219_v22 = vsub.f32 %v1000_v14, %v216_v21 }
 0x1e2   : > { %v209_v23 = vpop.xlane.xlu1 %208 }
 0x1e3   : > { %v224_v24 = vmul.f32 1.442695, %v219_v22  ;;  %v217_v25 = vsub.f32 %v192_v16, %v209_v23 }
 0x1e4   : > { %v315_v44 = vpop.permute.xlu0 %314 }
 0x1e5   : > { %1107 = vpow2.f32 %v224_v24  ;;  %v220_v26 = vmul.f32 1.442695, %v217_v25  ;;  %v326_v53 = vsel %vm145_vm0, %v315_v44, 0 }
 0x1e6   : > { %v212_v27 = vpop.xlane.xlu1 %211 }
 0x1e7   : > { %1109 = vpow2.f32 %v220_v26  ;;  %v218_v28 = vsub.f32 %v195_v19, %v212_v27 }
 0x1e9   : > { %v222_v31 = vmul.f32 1.442695, %v218_v28 }
 0x1ea   : > { %v246_v32 = vpop.permute.xlu1 %245 }
 0x1eb   : > { %1111 = vpow2.f32 %v222_v31  ;;  %v258_v33 = vand.u32 %v1229_v30, %v246_v32 }
 0x1ed   : > { %1002 = vmatprep.subr.bf16.mxu1 %v258_v33 }
 0x1ee   : > { %1003 = vmatpush3.bf16.msra.mxu1 %v258_v33 }
 0x1f2   : > { %v1108_v34 = vpop.eup %1107 }
 0x1f3   : > { %v232_v35 = vsel %vm213_vm1, %v1108_v34, 0.0 }
 0x1f4   : > { %v1110_v36 = vpop.eup %1109  ;;  %233 = vadd.xlane.f32.xlu1 %v232_v35 }
 0x1f5   : > { %v226_v37 = vsel %vm206_vm2, %v1110_v36, 0.0 }
 0x1f8   : > { %v1112_v38 = vpop.eup %1111  ;;  %227 = vadd.xlane.f32.xlu1 %v226_v37 }
 0x1f9   : > { %v229_v39 = vsel %vm206_vm2, %v1112_v38, 0.0 }
 0x1fc   : > { %230 = vadd.xlane.f32.xlu1 %v229_v39 }
 0x20d   : > { %243 = vrot.lane.b32.xlu1 %v1207_v6, %s1164_s13 }
 0x211   : > { %312 = vrot.lane.b32.xlu1 %v1207_v6, %s1165_s14 }
 0x215   : > { %308 = vrot.lane.b32.xlu1 %v1209_v7, %s1167_s15 }
 0x219   : > { %310 = vrot.lane.b32.xlu1 %v1218_v13, %s1167_s15 }
 0x27d   : > { %v234_v40 = vpop.xlane.xlu1 %233 }
 0x27e   : > { %1113 = vrcp.f32 %v234_v40 }
 0x281   : > { %v228_v41 = vpop.xlane.xlu1 %227 }
 0x282   : > { %1115 = vrcp.f32 %v228_v41 }
 0x285   : > { %v231_v42 = vpop.xlane.xlu1 %230 }
 0x286   : > { %1117 = vrcp.f32 %v231_v42 }
 0x289   : > { %v244_v43 = vpop.permute.xlu1 %243 }
 0x28a   : > { %1004 = vmatprep.subr.bf16.mxu1 %v244_v43 }
 0x28b   : > { %1005 = vmatpush3.bf16.msra.mxu1 %v244_v43  ;;  %v1114_v45 = vpop.eup %1113 }
 0x28c   : > { %1060 = vmatprep.subr.msk.bf16.mxu1 %vm145_vm0, %v315_v44  ;;  %v240_v49 = vmul.f32 %v1114_v45, %v1108_v34 }
 0x28d   : > { %v313_v47 = vpop.permute.xlu1 %312 }
 0x28e   : > { %v242_v54 = vpack.c.bf16 %v240_v49, %v240_v49  ;;  %v323_v56 = vsel %vm145_vm0, %v313_v47, 0 }
 0x28f   : > { %v1116_v46 = vpop.eup %1115 }
 0x290   : > { %v238_v50 = vmul.f32 %v1116_v46, %v1110_v36 }
 0x291   : > { %v309_v55 = vpop.permute.xlu1 %308 }
 0x293   : > { %v1118_v48 = vpop.eup %1117 }
 0x294   : > { %v239_v51 = vmul.f32 %v1118_v48, %v1112_v38 }
 0x295   : > { %v311_v57 = vpop.permute.xlu1 %310 }
 0x296   : > { %v241_v52 = vpack.c.bf16 %v239_v51, %v238_v50 }
 0x298   : > { %1006 = vmatprep.mubr.msk.bf16.mxu1 %vm206_vm2, %v241_v52 }
 0x299   : > { %1007 = vmatmul.mubr.msk.bf16.vlgmr.msra.gmra.mxu1 %vm206_vm2, %v242_v54 }
 0x29a   : > { %1011 = vmatpush3.bf16.xpose.msra.mxu1 %v326_v53  ;;  %1014 = vmatprep.mubr.msk.bf16.mxu1 %vm145_vm0, %v309_v55 }
 0x29b   : > { %1061 = vmatprep.subr.msk.bf16.mxu1 %vm145_vm0, %v313_v47 }
 0x2a2   : > { %1013 = vmatpush3.bf16.xpose.msra.mxu1 %v323_v56 }
 0x2a9   : > { %1015 = vmatmul.mubr.msk.bf16.vlgmr.msra.gmra.mxu1 %vm145_vm0, %v311_v57 }
 0x359   : > { %v1249_v58 = vpop.f32.mrf.mxu1 }
 0x35b   : > { %v1251_v59 = vpop.f32.mrf.mxu1 }
 0x35d   : > { %v1009_v60 = vpop.f32.mrf.mxu1 }
 0x35f   : > { %v1253_v61 = vpop.f32.mrf.mxu1 }
 0x369   : > { %v1016_v62 = vpop.f32.mrf.mxu1 }
 0x36a   : > { %v382_v4 = vsel %vm213_vm1, %v1016_v62, -inf }
 0x36b   : > { %v362_v63 = vpop.f32.mrf.mxu1 }
 0x36c   : > { %v376_v0 = vsel %vm206_vm2, %v362_v63, -inf }
 0x36d   : > { %377 = vmax.xlane.f32.xlu1 %v376_v0  ;;  %v1017_v1 = vpop.f32.mrf.mxu1 }
 0x36f   : > { %v365_v2 = vpop.f32.mrf.mxu1 }
 0x370   : > { %v379_v5 = vsel %vm206_vm2, %v365_v2, -inf }
 0x371   : > { %383 = vmax.xlane.f32.xlu1 %v382_v4  ;;  %380 = vmax.xlane.f32.xlu0 %v379_v5 }
 0x382   : > { %413 = vrot.lane.b32.xlu1 %v1204_v3, %s1168_s16 }
 0x3f6   : > { %v378_v8 = vpop.xlane.xlu1 %377 }
 0x3f7   : > { %v385_v9 = vsub.f32 %v362_v63, %v378_v8 }
 0x3f9   : > { %v388_v15 = vmul.f32 1.442695, %v385_v9 }
 0x3fa   : > { %v384_v10 = vpop.xlane.xlu1 %383  ;;  %v381_v11 = vpop.xlane.xlu0 %380 }
 0x3fb   : > { %v387_v12 = vsub.f32 %v1016_v62, %v384_v10  ;;  %v386_v14 = vsub.f32 %v365_v2, %v381_v11 }
 0x3fd   : > { %v392_v16 = vmul.f32 1.442695, %v387_v12  ;;  %v390_v17 = vmul.f32 1.442695, %v386_v14 }
 0x3fe   : > { %v414_v18 = vpop.permute.xlu1 %413 }
 0x3ff   : > { %1119 = vpow2.f32 %v392_v16  ;;  %v423_v19 = vand.u32 %v414_v18, %v1229_v30 }
 0x400   : > { %1121 = vpow2.f32 %v390_v17 }
 0x401   : > { %1123 = vpow2.f32 %v388_v15  ;;  %1018 = vmatprep.subr.bf16.mxu0 %v423_v19 }
 0x402   : > { %1019 = vmatpush3.bf16.msra.mxu0 %v423_v19 }
 0x40c   : > { %v1120_v20 = vpop.eup %1119 }
 0x40d   : > { %v1122_v21 = vpop.eup %1121  ;;  %v400_v22 = vsel %vm213_vm1, %v1120_v20, 0.0 }
 0x40e   : > { %v1124_v23 = vpop.eup %1123  ;;  %401 = vadd.xlane.f32.xlu0 %v400_v22  ;;  %v397_v24 = vsel %vm206_vm2, %v1122_v21, 0.0 }
 0x40f   : > { %398 = vadd.xlane.f32.xlu1 %v397_v24  ;;  %v394_v25 = vsel %vm206_vm2, %v1124_v23, 0.0 }
 0x412   : > { %395 = vadd.xlane.f32.xlu0 %v394_v25 }
 0x420   : > { %479 = vrot.lane.b32.xlu1 %v1204_v3, %s1169_s17 }
 0x424   : > { %477 = vrot.lane.b32.xlu1 %v1207_v6, %s1169_s17 }
 0x428   : > { %411 = vrot.lane.b32.xlu0 %v1207_v6, %s1168_s16  ;;  %475 = vrot.lane.b32.xlu1 %v1218_v13, %s1170_s18 }
 0x42c   : > { %473 = vrot.lane.b32.xlu0 %v1209_v7, %s1170_s18 }
 0x497   : > { %v402_v26 = vpop.xlane.xlu0 %401 }
 0x498   : > { %v399_v27 = vpop.xlane.xlu1 %398  ;;  %1125 = vrcp.f32 %v402_v26 }
 0x499   : > { %1127 = vrcp.f32 %v399_v27 }
 0x49b   : > { %v396_v28 = vpop.xlane.xlu0 %395 }
 0x49c   : > { %1129 = vrcp.f32 %v396_v28  ;;  %v480_v31 = vpop.permute.xlu1 %479 }
 0x49d   : > { %v491_v39 = vsel %vm145_vm0, %v480_v31, 0 }
 0x49f   : > { %v412_v29 = vpop.permute.xlu0 %411 }
 0x4a0   : > { %1020 = vmatprep.subr.bf16.mxu0 %v412_v29  ;;  %v478_v42 = vpop.permute.xlu1 %477 }
 0x4a1   : > { %1021 = vmatpush3.bf16.msra.mxu0 %v412_v29  ;;  %v488_v43 = vsel %vm145_vm0, %v478_v42, 0 }
 0x4a2   : > { %1062 = vmatprep.subr.msk.bf16.mxu0 %vm145_vm0, %v480_v31 }
 0x4a3   : > { %v474_v41 = vpop.permute.xlu0 %473 }
 0x4a4   : > { %v476_v44 = vpop.permute.xlu1 %475 }
 0x4a5   : > { %v1126_v32 = vpop.eup %1125 }
 0x4a6   : > { %v1128_v33 = vpop.eup %1127  ;;  %v408_v35 = vmul.f32 %v1126_v32, %v1120_v20 }
 0x4a7   : > { %v407_v37 = vmul.f32 %v1128_v33, %v1122_v21 }
 0x4a8   : > { %v410_v40 = vpack.c.bf16 %v408_v35, %v408_v35 }
 0x4a9   : > { %v1130_v34 = vpop.eup %1129 }
 0x4aa   : > { %v406_v36 = vmul.f32 %v1130_v34, %v1124_v23 }
 0x4ac   : > { %v409_v38 = vpack.c.bf16 %v407_v37, %v406_v36 }
 0x4ae   : > { %1022 = vmatprep.mubr.msk.bf16.mxu0 %vm206_vm2, %v409_v38 }
 0x4af   : > { %1023 = vmatmul.mubr.msk.bf16.vlgmr.msra.gmra.mxu0 %vm206_vm2, %v410_v40 }
 0x4b0   : > { %1027 = vmatpush3.bf16.xpose.msra.mxu0 %v491_v39  ;;  %1030 = vmatprep.mubr.msk.bf16.mxu0 %vm145_vm0, %v474_v41 }
 0x4b1   : > { %1063 = vmatprep.subr.msk.bf16.mxu0 %vm145_vm0, %v478_v42 }
 0x4b8   : > { %1029 = vmatpush3.bf16.xpose.msra.mxu0 %v488_v43 }
 0x4bf   : > { %1031 = vmatmul.mubr.msk.bf16.vlgmr.msra.gmra.mxu0 %vm145_vm0, %v476_v44 }
 0x56f   : > { %v1278_v45 = vpop.f32.mrf.mxu0 }
 0x571   : > { %v1280_v46 = vpop.f32.mrf.mxu0 }
 0x572   : > { %v1090_v47 = vpack.i.bf16 %v1280_v46, %v1278_v45 }
 0x573   : > { %v1025_v48 = vpop.f32.mrf.mxu0 }
 0x575   : > { %v1284_v49 = vpop.f32.mrf.mxu0 }
 0x57f   : > { %v1032_v50 = vpop.f32.mrf.mxu0 }
 0x580   : > { %v547_v55 = vsel %vm213_vm1, %v1032_v50, -inf }
 0x581   : > { %v527_v51 = vpop.f32.mrf.mxu0 }
 0x582   : > { %v541_v52 = vsel %vm206_vm2, %v527_v51, -inf }
 0x583   : > { %542 = vmax.xlane.f32.xlu0 %v541_v52  ;;  %v1033_v53 = vpop.f32.mrf.mxu0 }
 0x585   : > { %v530_v54 = vpop.f32.mrf.mxu0 }
 0x586   : > { %v544_v56 = vsel %vm206_vm2, %v530_v54, -inf }
 0x587   : > { %548 = vmax.xlane.f32.xlu0 %v547_v55  ;;  %545 = vmax.xlane.f32.xlu1 %v544_v56 }
 0x598   : > { %578 = vrot.lane.b32.xlu1 %v1204_v3, %s1171_s19 }
 0x60c   : > { %v543_v57 = vpop.xlane.xlu0 %542 }
 0x60d   : > { %v550_v60 = vsub.f32 %v527_v51, %v543_v57 }
 0x60f   : > { %v553_v2 = vmul.f32 1.442695, %v550_v60 }
 0x610   : > { %v549_v62 = vpop.xlane.xlu0 %548  ;;  %v546_v63 = vpop.xlane.xlu1 %545 }
 0x611   : > { %v552_v0 = vsub.f32 %v1032_v50, %v549_v62  ;;  %v551_v1 = vsub.f32 %v530_v54, %v546_v63 }
 0x613   : > { %v557_v4 = vmul.f32 1.442695, %v552_v0  ;;  %v555_v5 = vmul.f32 1.442695, %v551_v1 }
 0x614   : > { %v579_v8 = vpop.permute.xlu1 %578 }
 0x615   : > { %1131 = vpow2.f32 %v557_v4  ;;  %v588_v9 = vand.u32 %v579_v8, %v1229_v30 }
 0x616   : > { %1133 = vpow2.f32 %v555_v5 }
 0x617   : > { %1135 = vpow2.f32 %v553_v2  ;;  %1034 = vmatprep.subr.bf16.mxu1 %v588_v9 }
 0x618   : > { %1035 = vmatpush3.bf16.msra.mxu1 %v588_v9 }
 0x622   : > { %v1132_v10 = vpop.eup %1131 }
 0x623   : > { %v1134_v11 = vpop.eup %1133  ;;  %v565_v12 = vsel %vm213_vm1, %v1132_v10, 0.0 }
 0x624   : > { %v1136_v14 = vpop.eup %1135  ;;  %566 = vadd.xlane.f32.xlu0 %v565_v12  ;;  %v562_v15 = vsel %vm206_vm2, %v1134_v11, 0.0 }
 0x625   : > { %563 = vadd.xlane.f32.xlu1 %v562_v15  ;;  %v559_v16 = vsel %vm206_vm2, %v1136_v14, 0.0 }
 0x628   : > { %560 = vadd.xlane.f32.xlu0 %v559_v16 }
 0x636   : > { %644 = vrot.lane.b32.xlu1 %v1204_v3, %s1172_s20 }
 0x63a   : > { %642 = vrot.lane.b32.xlu1 %v1207_v6, %s1172_s20 }
 0x63e   : > { %576 = vrot.lane.b32.xlu0 %v1207_v6, %s1171_s19  ;;  %640 = vrot.lane.b32.xlu1 %v1218_v13, %s1173_s21 }
 0x642   : > { %638 = vrot.lane.b32.xlu0 %v1209_v7, %s1173_s21 }
 0x6ad   : > { %v567_v17 = vpop.xlane.xlu0 %566 }
 0x6ae   : > { %v564_v18 = vpop.xlane.xlu1 %563  ;;  %1137 = vrcp.f32 %v567_v17 }
 0x6af   : > { %1139 = vrcp.f32 %v564_v18 }
 0x6b1   : > { %v561_v19 = vpop.xlane.xlu0 %560 }
 0x6b2   : > { %1141 = vrcp.f32 %v561_v19  ;;  %v645_v21 = vpop.permute.xlu1 %644 }
 0x6b3   : > { %v656_v7 = vsel %vm145_vm0, %v645_v21, 0 }
 0x6b5   : > { %v577_v20 = vpop.permute.xlu0 %576 }
 0x6b6   : > { %1036 = vmatprep.subr.bf16.mxu1 %v577_v20  ;;  %v643_v31 = vpop.permute.xlu1 %642 }
 0x6b7   : > { %1037 = vmatpush3.bf16.msra.mxu1 %v577_v20  ;;  %v653_v32 = vsel %vm145_vm0, %v643_v31, 0 }
 0x6b8   : > { %1064 = vmatprep.subr.msk.bf16.mxu1 %vm145_vm0, %v645_v21 }
 0x6b9   : > { %v639_v29 = vpop.permute.xlu0 %638 }
 0x6ba   : > { %v641_v33 = vpop.permute.xlu1 %640 }
 0x6bb   : > { %v1138_v22 = vpop.eup %1137 }
 0x6bc   : > { %v1140_v23 = vpop.eup %1139  ;;  %v573_v25 = vmul.f32 %v1138_v22, %v1132_v10 }
 0x6bd   : > { %v572_v13 = vmul.f32 %v1140_v23, %v1134_v11 }
 0x6be   : > { %v575_v28 = vpack.c.bf16 %v573_v25, %v573_v25 }
 0x6bf   : > { %v1142_v24 = vpop.eup %1141 }
 0x6c0   : > { %v571_v26 = vmul.f32 %v1142_v24, %v1136_v14 }
 0x6c2   : > { %v574_v27 = vpack.c.bf16 %v572_v13, %v571_v26 }
 0x6c4   : > { %1038 = vmatprep.mubr.msk.bf16.mxu1 %vm206_vm2, %v574_v27 }
 0x6c5   : > { %1039 = vmatmul.mubr.msk.bf16.vlgmr.msra.gmra.mxu1 %vm206_vm2, %v575_v28 }
 0x6c6   : > { %1043 = vmatpush3.bf16.xpose.msra.mxu1 %v656_v7  ;;  %1046 = vmatprep.mubr.msk.bf16.mxu1 %vm145_vm0, %v639_v29 }
 0x6c7   : > { %1065 = vmatprep.subr.msk.bf16.mxu1 %vm145_vm0, %v643_v31 }
 0x6ce   : > { %1045 = vmatpush3.bf16.xpose.msra.mxu1 %v653_v32 }
 0x6d5   : > { %1047 = vmatmul.mubr.msk.bf16.vlgmr.msra.gmra.mxu1 %vm145_vm0, %v641_v33 }
 0x785   : > { %v1040_v34 = vpop.f32.mrf.mxu1 }
 0x787   : > { %v624_v35 = vpop.f32.mrf.mxu1 }
 0x788   : > { %v1095_v36 = vpack.i.bf16 %v624_v35, %v1040_v34 }
 0x789   : > { %v1041_v37 = vpop.f32.mrf.mxu1 }
 0x78b   : > { %v627_v38 = vpop.f32.mrf.mxu1 }
 0x795   : > { %v1048_v39 = vpop.f32.mrf.mxu1 }
 0x796   : > { %v712_v44 = vsel %vm213_vm1, %v1048_v39, -inf }
 0x797   : > { %v692_v40 = vpop.f32.mrf.mxu1 }
 0x798   : > { %v706_v41 = vsel %vm206_vm2, %v692_v40, -inf }
 0x799   : > { %707 = vmax.xlane.f32.xlu0 %v706_v41  ;;  %v1049_v42 = vpop.f32.mrf.mxu1 }
 0x79b   : > { %v695_v43 = vpop.f32.mrf.mxu1 }
 0x79c   : > { %v709_v48 = vsel %vm206_vm2, %v695_v43, -inf }
 0x79d   : > { %713 = vmax.xlane.f32.xlu0 %v712_v44  ;;  %710 = vmax.xlane.f32.xlu1 %v709_v48 }
 0x822   : > { %v708_v50 = vpop.xlane.xlu0 %707 }
 0x823   : > { %v715_v51 = vsub.f32 %v692_v40, %v708_v50 }
 0x825   : > { %v718_v56 = vmul.f32 1.442695, %v715_v51 }
 0x826   : > { %v714_v52 = vpop.xlane.xlu0 %713  ;;  %v711_v53 = vpop.xlane.xlu1 %710 }
 0x827   : > { %v717_v54 = vsub.f32 %v1048_v39, %v714_v52  ;;  %v716_v55 = vsub.f32 %v695_v43, %v711_v53 }
 0x829   : > { %v722_v57 = vmul.f32 1.442695, %v717_v54  ;;  %v720_v60 = vmul.f32 1.442695, %v716_v55 }
 0x82b   : > { %1143 = vpow2.f32 %v722_v57 }
 0x82c   : > { %1145 = vpow2.f32 %v720_v60 }
 0x82d   : > { %1147 = vpow2.f32 %v718_v56 }
 0x838   : > { %v1144_v62 = vpop.eup %1143 }
 0x839   : > { %v1146_v63 = vpop.eup %1145  ;;  %v730_v0 = vsel %vm213_vm1, %v1144_v62, 0.0 }
 0x83a   : > { %v1148_v1 = vpop.eup %1147  ;;  %731 = vadd.xlane.f32.xlu0 %v730_v0  ;;  %v727_v2 = vsel %vm206_vm2, %v1146_v63, 0.0 }
 0x83b   : > { %728 = vadd.xlane.f32.xlu1 %v727_v2  ;;  %v724_v4 = vsel %vm206_vm2, %v1148_v1, 0.0 }
 0x83e   : > { %725 = vadd.xlane.f32.xlu0 %v724_v4 }
 0x84c   : > { %743 = vrot.lane.b32.xlu1 %v1204_v3, %s1174_s22 }
 0x850   : > { %1091 = vrot.lane.b32.xlu1 %v1090_v47, %s1175_s23 }
 0x854   : > { %808 = vrot.lane.b32.xlu1 %v1284_v49, %s1175_s23  ;;  %741 = vrot.lane.b32.xlu0 %v1207_v6, %s1174_s22 }
 0x858   : > { %820 = vrot.lane.b32.xlu1 %v627_v38, %s1176_s24  ;;  %1096 = vrot.lane.b32.xlu0 %v1095_v36, %s1176_s24  ;;  %v869_v36 = vld [vmem:[%s116_s28 + $0x8] sm:$0x1] }
 0x8c3   : > { %v732_v5 = vpop.xlane.xlu0 %731 }
 0x8c4   : > { %v729_v8 = vpop.xlane.xlu1 %728  ;;  %1149 = vrcp.f32 %v732_v5 }
 0x8c5   : > { %1151 = vrcp.f32 %v729_v8 }
 0x8c7   : > { %v726_v9 = vpop.xlane.xlu0 %725 }
 0x8c8   : > { %1153 = vrcp.f32 %v726_v9  ;;  %v744_v10 = vpop.permute.xlu1 %743 }
 0x8c9   : > { %v753_v3 = vand.u32 %v744_v10, %v1229_v30 }
 0x8cb   : > { %1050 = vmatprep.subr.bf16.mxu0 %v753_v3  ;;  %v742_v11 = vpop.permute.xlu0 %741 }
 0x8cc   : > { %1051 = vmatpush3.bf16.msra.mxu0 %v753_v3  ;;  %v1092_v20 = vpop.permute.xlu1 %1091 }
 0x8cd   : > { %1052 = vmatprep.subr.bf16.mxu0 %v742_v11  ;;  %v1094_v23 = vunpack.i.h.bf16 %v1092_v20  ;;  %v1093_v24 = vunpack.i.l.bf16 %v1092_v20 }
 0x8cf   : > { %v1097_v22 = vpop.permute.xlu0 %1096  ;;  %v839_v27 = vsel %vm145_vm0, %v1251_v59, %v1094_v23  ;;  %v841_v28 = vsel %vm145_vm0, %v1249_v58, %v1093_v24 }
 0x8d0   : > { %1053 = vmatpush3.bf16.msra.mxu0 %v742_v11  ;;  %v809_v21 = vpop.permute.xlu1 %808  ;;  %v1099_v25 = vunpack.i.h.bf16 %v1097_v22  ;;  %v1098_v26 = vunpack.i.l.bf16 %v1097_v22 }
 0x8d1   : > { %v1150_v45 = vpop.eup %1149  ;;  %v840_v29 = vsel %vm145_vm0, %v1253_v61, %v809_v21 }
 0x8d2   : > { %v1152_v46 = vpop.eup %1151  ;;  %v738_v47 = vmul.f32 %v1150_v45, %v1144_v62  ;;  %v843_v33 = vsel %vm842_vm4, %v839_v27, %v1099_v25  ;;  %v845_v59 = vsel %vm842_vm4, %v841_v28, %v1098_v26 }
 0x8d3   : > { %v737_v12 = vmul.f32 %v1152_v46, %v1146_v63 }
 0x8d4   : > { %v740_v15 = vpack.c.bf16 %v738_v47, %v738_v47  ;;  %v821_v13 = vpop.permute.xlu1 %820 }
 0x8d5   : > { %v1154_v6 = vpop.eup %1153  ;;  %v844_v34 = vsel %vm842_vm4, %v840_v29, %v821_v13 }
 0x8d6   : > { %v736_v49 = vmul.f32 %v1154_v6, %v1148_v1 }
 0x8d8   : > { %v739_v14 = vpack.c.bf16 %v737_v12, %v736_v49 }
 0x8da   : > { %1054 = vmatprep.mubr.msk.bf16.mxu0 %vm206_vm2, %v739_v14 }
 0x8db   : > { %1055 = vmatmul.mubr.msk.bf16.vlgmr.msra.gmra.mxu0 %vm206_vm2, %v740_v15 }
 0x99b   : > { %v1056_v16 = vpop.f32.mrf.mxu0 }
 0x99d   : > { %v789_v17 = vpop.f32.mrf.mxu0 }
 0x99e   : > { %v1100_v30 = vpack.i.bf16 %v789_v17, %v1056_v16 }
 0x99f   : > { %v1057_v18 = vpop.f32.mrf.mxu0 }
 0x9a0   : > { %1101 = vrot.lane.b32.xlu0 %v1100_v30, %s1177_s25 }
 0x9a1   : > { %v792_v19 = vpop.f32.mrf.mxu0 }
 0x9a2   : > { %832 = vrot.lane.b32.xlu1 %v792_v19, %s1177_s25 }
 0xa12   : > { %v1102_v7 = vpop.permute.xlu0 %1101 }
 0xa13   : > { %v1104_v31 = vunpack.i.h.bf16 %v1102_v7  ;;  %v1103_v32 = vunpack.i.l.bf16 %v1102_v7 }
 0xa14   : > { %v833_v35 = vpop.permute.xlu1 %832 }
 0xa15   : > { %v847_v37 = vsel %vm846_vm5, %v843_v33, %v1104_v31  ;;  %v848_v38 = vsel %vm846_vm5, %v844_v34, %v833_v35  ;;  %v849_v39 = vsel %vm846_vm5, %v845_v59, %v1103_v32 }
 0xa16   : > { %v959_v40 = vpack.c.bf16 %v847_v37, %v847_v37  ;;  %v960_v58 = vpack.c.bf16 %v848_v38, %v848_v38  ;;  %v961_v41 = vpack.c.bf16 %v849_v39, %v849_v39 }
 0xa18   : > { %864 = vst.msk [vmem:[%s116_s28] sm:$0xf] %vm863_vm8, %v959_v40  ;;  %865 = vst.msk [vmem:[%s116_s28 + $0x4] sm:$0xf] %vm863_vm8, %v960_v58  ;;  %v870_v61 = vsel %vm868_vm9, %v961_v41, %v869_v36 }
 0xa19   : > { %871 = vst [vmem:[%s116_s28 + $0x8] sm:$0x1] %v870_v61 }
 0xa1a PF: > { %s11_s6 = sadd.s32 1, %s1161_s6  }
 0xa1b   : > { %p8_p4 = scmp.ge.s32.totalorder %s11_s6, 4  }
 0xa1d   :  { %10 = sbr.rel (!%p8_p4) target bundleno = 1 (0x1), region = 54 }

// kernel: vit_forward.17
= control target key start
LH: loop header
LB: loop body
LE: loop exit
PB: predicated region body
PF: predicated region fallthrough
CT: control target
= control target key end

     0   :  { %v217_v0 = vmov 0.0   ;;  %vm218_vm0 = vmmov 0   ;;  %vm75_vm1 = vcmask 523264   ;;  %vm151_vm2 = vcmask 261120   ;;  %s305_s1 = inlined_call_operand.vmem [shape: bf16[64,32], index: 1, kind: input, shape index: {}]   ;;  %s306_s0 = inlined_call_operand.vmem [shape: bf16[34,64], index: 0, kind: input, shape index: {}]   ;;  %s307_s2 = inlined_call_operand.vmem [shape: f32[1,32], index: 2, kind: input, shape index: {}]   ;;  %s308_s3 = inlined_call_operand.vmem [shape: f32[34,32], index: 3, kind: input, shape index: {}]   ;;  %s309_s4 = inlined_call_operand.vmem [shape: f32[34,32], index: 4, kind: output, shape index: {}]  }
   0x1   :  { %180 = vmatprep.subr.bf16.mxu0 %v217_v0  ;;  %200 = vmatprep.subr.bf16.mxu1 %v217_v0  ;;  %v210_v1 = vld [vmem:[%s305_s1 + $0x18] sm:$0xff]   ;;  %v211_v2 = vld [vmem:[%s305_s1 + $0x10] sm:$0xff]   ;;  %v212_v3 = vld [vmem:[%s305_s1 + $0x8] sm:$0xff]   ;;  %vm156_vm3 = vcmask 254976  }
   0x2   :  { %188 = vmatprep.mubr.msk.bf16.mxu0 %vm218_vm0, %v217_v0  ;;  %192 = vmatprep.mubr.msk.bf16.mxu1 %vm218_vm0, %v217_v0  ;;  %v213_v4 = vld [vmem:[%s305_s1] sm:$0xff]   ;;  %v215_v6 = vld [vmem:[%s306_s0 + $0x8] sm:$0xff]   ;;  %v216_v7 = vld [vmem:[%s306_s0 + $0x10] ss:$0 sps:$4 sm:$0x11]  }
   0x3   :  { %181 = vmatpush3.bf16.msra.mxu0 %v210_v1  ;;  %204 = vmatpush3.bf16.msra.mxu1 %v210_v1  ;;  %v214_v5 = vld [vmem:[%s306_s0] sm:$0xff]   ;;  %v143_v12 = vld [vmem:[%s308_s3 + $0x10] sm:$0xff]  ;;  %v142_v20 = vld [vmem:[%s308_s3 + $0x8] sm:$0xff] }
   0x4   :  { %182 = vmatprep.subr.bf16.mxu0 %v217_v0  ;;  %201 = vmatprep.subr.bf16.mxu1 %v217_v0  ;;  %v162_v8 = vld [vmem:[%s307_s2] ss:$0 sm:$0xff]  ;;  %v144_v22 = vld [vmem:[%s308_s3 + $0x18] sm:$0xff] }
   0x5   :  { %v141_v10 = vld [vmem:[%s308_s3] sm:$0xff] }
   0x6   :  { %v145_v30 = vld [vmem:[%s308_s3 + $0x20] sm:$0x3] }
   0x7   :  { %183 = vmatpush3.bf16.msra.mxu0 %v211_v2  ;;  %205 = vmatpush3.bf16.msra.mxu1 %v211_v2 }
   0x8   :  { %184 = vmatprep.subr.bf16.mxu0 %v217_v0  ;;  %202 = vmatprep.subr.bf16.mxu1 %v217_v0 }
   0xb   :  { %185 = vmatpush3.bf16.msra.mxu0 %v212_v3  ;;  %206 = vmatpush3.bf16.msra.mxu1 %v212_v3 }
   0xc   :  { %186 = vmatprep.subr.bf16.mxu0 %v217_v0  ;;  %203 = vmatprep.subr.bf16.mxu1 %v217_v0 }
   0xf   :  { %187 = vmatpush3.bf16.msra.mxu0 %v213_v4  ;;  %207 = vmatpush3.bf16.msra.mxu1 %v213_v4 }
  0x12   :  { %189 = vmatmul.mubr.msk.bf16.vlgmr.msra.gmra.mxu0 %vm75_vm1, %v214_v5  ;;  %193 = vmatmul.mubr.msk.bf16.vlgmr.msra.gmra.mxu1 %vm75_vm1, %v215_v6 }
  0x13   :  { %196 = vmatprep.mubr.msk.bf16.mxu1 %vm218_vm0, %v217_v0 }
  0x1a   :  { %197 = vmatmul.mubr.msk.bf16.gmra.mxu1 %vm75_vm1, %v216_v7 }
  0xd2   :  { %v119_v9 = vpop.f32.mrf.mxu0  ;;  %v127_v11 = vpop.f32.mrf.mxu1 }
  0xd3   :  { %v120_v13 = vadd.f32 %v162_v8, %v119_v9  ;;  %v128_v14 = vadd.f32 %v162_v8, %v127_v11 }
  0xd4   :  { %v190_v15 = vpop.f32.mrf.mxu0  ;;  %v194_v16 = vpop.f32.mrf.mxu1 }
  0xd5   :  { %v146_v17 = vadd.f32 %v141_v10, %v120_v13  ;;  %v148_v18 = vadd.f32 %v143_v12, %v128_v14 }
  0xd6   :  { %v122_v19 = vpop.f32.mrf.mxu0  ;;  %v130_v21 = vpop.f32.mrf.mxu1 }
  0xd7   :  { %152 = vst.msk [vmem:[%s309_s4] sm:$0xff] %vm151_vm2, %v146_v17  ;;  %154 = vst.msk [vmem:[%s309_s4 + $0x10] sm:$0xff] %vm151_vm2, %v148_v18  ;;  %v123_v23 = vadd.f32 %v162_v8, %v122_v19  ;;  %v131_v24 = vadd.f32 %v162_v8, %v130_v21 }
  0xd8   :  { %v191_v25 = vpop.f32.mrf.mxu0  ;;  %v195_v26 = vpop.f32.mrf.mxu1 }
  0xd9   :  { %v147_v27 = vadd.f32 %v142_v20, %v123_v23  ;;  %v149_v28 = vadd.f32 %v144_v22, %v131_v24 }
  0xda   :  { %v135_v29 = vpop.f32.mrf.mxu1 }
  0xdb   :  { %153 = vst.msk [vmem:[%s309_s4 + $0x8] sm:$0xff] %vm151_vm2, %v147_v27  ;;  %155 = vst.msk [vmem:[%s309_s4 + $0x18] sm:$0xff] %vm151_vm2, %v149_v28  ;;  %v136_v31 = vadd.f32 %v162_v8, %v135_v29 }
  0xdc   :  { %v198_v32 = vpop.f32.mrf.mxu1 }
  0xdd   :  { %v150_v33 = vadd.f32 %v145_v30, %v136_v31 }
  0xde   :  { %v138_v34 = vpop.f32.mrf.mxu1 }
  0xdf   :  { %157 = vst.msk [vmem:[%s309_s4 + $0x20] sm:$0x3] %vm156_vm3, %v150_v33 }
  0xe0   :  { %v199_v35 = vpop.f32.mrf.mxu1 }

// kernel: vit_forward.16
= control target key start
LH: loop header
LB: loop body
LE: loop exit
PB: predicated region body
PF: predicated region fallthrough
CT: control target
= control target key end

     0   :  { %vm26_vm0 = vcmask 261120   ;;  %vm39_vm1 = vcmask 254976   ;;  %v353_v35 = vmov 0.0   ;;  %vm354_vm2 = vmmov 0   ;;  %s465_s0 = inlined_call_operand.vmem [shape: f32[34,32], index: 0, kind: input, shape index: {}]   ;;  %s466_s3 = inlined_call_operand.vmem [shape: bf16[32,64], index: 3, kind: input, shape index: {}]   ;;  %s467_s1 = inlined_call_operand.vmem [shape: f32[1,32], index: 1, kind: input, shape index: {}]   ;;  %s468_s2 = inlined_call_operand.vmem [shape: f32[1,32], index: 2, kind: input, shape index: {}]   ;;  %s469_s4 = inlined_call_operand.vmem [shape: f32[1,64], index: 4, kind: input, shape index: {}]   ;;  %s470_s5 = inlined_call_operand.vmem [shape: bf16[34,64], index: 5, kind: output, shape index: {}]  }
   0x1   :  { %v23_v0 = vld [vmem:[%s465_s0 + $0x10] sm:$0xff]  ;;  %v24_v1 = vld [vmem:[%s465_s0 + $0x18] sm:$0xff]  ;;  %v21_v2 = vld [vmem:[%s465_s0] sm:$0xff]  ;;  %325 = vmatprep.subr.bf16.mxu1 %v353_v35  ;;  %309 = vmatprep.subr.bf16.mxu0 %v353_v35  ;;  %vm275_vm3 = vcmask 519168   ;;  %vm280_vm4 = vcmask 516096  }
   0x2   :  { %v33_v3 = vsel %vm26_vm0, %v23_v0, 0.0  ;;  %v27_v4 = vsel %vm26_vm0, %v21_v2, 0.0  ;;  %v22_v5 = vld [vmem:[%s465_s0 + $0x8] sm:$0xff]  ;;  %v36_v6 = vsel %vm26_vm0, %v24_v1, 0.0  ;;  %v25_v8 = vld [vmem:[%s465_s0 + $0x20] sm:$0x3]  ;;  %317 = vmatprep.mubr.msk.bf16.mxu1 %vm354_vm2, %v353_v35  ;;  %313 = vmatprep.mubr.msk.bf16.mxu0 %vm354_vm2, %v353_v35 }
   0x3   :  { %34 = vadd.xlane.f32.xlu0 %v33_v3  ;;  %28 = vadd.xlane.f32.xlu1 %v27_v4  ;;  %v30_v7 = vsel %vm26_vm0, %v22_v5, 0.0  ;;  %v40_v9 = vsel %vm39_vm1, %v25_v8, 0.0  ;;  %v331_v36 = vld [vmem:[%s466_s3 + $0x8] sm:$0xff]   ;;  %v332_v37 = vld [vmem:[%s466_s3] sm:$0xff]  }
   0x4   :  { %327 = vmatpush3.bf16.msra.mxu1 %v331_v36  ;;  %310 = vmatpush3.bf16.msra.mxu0 %v331_v36  ;;  %v286_v55 = vld [vmem:[%s467_s1] ss:$0 sm:$0xff] }
   0x5   :  { %326 = vmatprep.subr.bf16.mxu1 %v353_v35  ;;  %311 = vmatprep.subr.bf16.mxu0 %v353_v35  ;;  %v287_v60 = vld [vmem:[%s468_s2] ss:$0 sm:$0xff] }
   0x7   :  { %37 = vadd.xlane.f32.xlu0 %v36_v6  ;;  %31 = vadd.xlane.f32.xlu1 %v30_v7 }
   0x8   :  { %328 = vmatpush3.bf16.msra.mxu1 %v332_v37  ;;  %312 = vmatpush3.bf16.msra.mxu0 %v332_v37 }
   0xb   :  { %41 = vadd.xlane.f32.xlu0 %v40_v9 }
  0x8c   :  { %v35_v10 = vpop.xlane.xlu0 %34  ;;  %v29_v11 = vpop.xlane.xlu1 %28 }
  0x8d   :  { %v46_v12 = vmul.f32 0.03125, %v35_v10  ;;  %v44_v13 = vmul.f32 0.03125, %v29_v11 }
  0x8f   :  { %v405_v14 = vsub.f32 %v23_v0, %v46_v12  ;;  %v407_v15 = vsub.f32 %v21_v2, %v44_v13 }
  0x90   :  { %v38_v16 = vpop.xlane.xlu0 %37  ;;  %v32_v17 = vpop.xlane.xlu1 %31 }
  0x91   :  { %v47_v18 = vmul.f32 0.03125, %v38_v16  ;;  %v56_v19 = vmul.f32 %v405_v14, %v405_v14  ;;  %v45_v20 = vmul.f32 0.03125, %v32_v17  ;;  %v54_v21 = vmul.f32 %v407_v15, %v407_v15 }
  0x93   :  { %v52_v22 = vsub.f32 %v24_v1, %v47_v18  ;;  %v65_v23 = vsel %vm26_vm0, %v56_v19, 0.0  ;;  %v414_v24 = vsub.f32 %v22_v5, %v45_v20  ;;  %v59_v28 = vsel %vm26_vm0, %v54_v21, 0.0 }
  0x94   :  { %v42_v25 = vpop.xlane.xlu0 %41  ;;  %66 = vadd.xlane.f32.xlu1 %v65_v23 }
  0x95   :  { %v48_v26 = vmul.f32 0.03125, %v42_v25  ;;  %v57_v27 = vmul.f32 %v52_v22, %v52_v22  ;;  %v55_v29 = vmul.f32 %v414_v24, %v414_v24 }
  0x97   :  { %v53_v30 = vsub.f32 %v25_v8, %v48_v26  ;;  %v68_v31 = vsel %vm26_vm0, %v57_v27, 0.0  ;;  %v62_v33 = vsel %vm26_vm0, %v55_v29, 0.0 }
  0x98   :  { %69 = vadd.xlane.f32.xlu0 %v68_v31  ;;  %60 = vadd.xlane.f32.xlu1 %v59_v28 }
  0x99   :  { %v58_v32 = vmul.f32 %v53_v30, %v53_v30 }
  0x9b   :  { %v71_v34 = vsel %vm39_vm1, %v58_v32, 0.0 }
  0x9c   :  { %72 = vadd.xlane.f32.xlu1 %v71_v34  ;;  %63 = vadd.xlane.f32.xlu0 %v62_v33 }
 0x11d   :  { %v67_v38 = vpop.xlane.xlu1 %66 }
 0x11e   :  { %v76_v39 = vmul.f32 0.03125, %v67_v38 }
 0x120   :  { %v81_v40 = vadd.f32 1e-06, %v76_v39 }
 0x121   :  { %v70_v41 = vpop.xlane.xlu0 %69  ;;  %v61_v42 = vpop.xlane.xlu1 %60 }
 0x122   :  { %333 = vrsqrt.f32 %v81_v40  ;;  %v77_v43 = vmul.f32 0.03125, %v70_v41  ;;  %v74_v44 = vmul.f32 0.03125, %v61_v42 }
 0x124   :  { %v82_v45 = vadd.f32 1e-06, %v77_v43  ;;  %v79_v46 = vadd.f32 1e-06, %v74_v44 }
 0x125   :  { %v64_v47 = vpop.xlane.xlu0 %63  ;;  %v73_v48 = vpop.xlane.xlu1 %72 }
 0x126   :  { %335 = vrsqrt.f32 %v82_v45  ;;  %v75_v49 = vmul.f32 0.03125, %v64_v47  ;;  %v78_v50 = vmul.f32 0.03125, %v73_v48 }
 0x127   :  { %337 = vrsqrt.f32 %v79_v46 }
 0x128   :  { %v80_v51 = vadd.f32 1e-06, %v75_v49  ;;  %v83_v52 = vadd.f32 1e-06, %v78_v50 }
 0x12a   :  { %339 = vrsqrt.f32 %v80_v51 }
 0x12b   :  { %341 = vrsqrt.f32 %v83_v52 }
 0x12f   :  { %v334_v53 = vpop.eup %333 }
 0x130   :  { %v91_v54 = vmul.f32 %v334_v53, %v405_v14  ;;  %v288_v14 = vld [vmem:[%s469_s4] ss:$0 sm:$0xff] }
 0x132   :  { %v103_v59 = vmul.f32 %v286_v55, %v91_v54 }
 0x133   :  { %v336_v56 = vpop.eup %335 }
 0x134   :  { %v338_v57 = vpop.eup %337  ;;  %v92_v58 = vmul.f32 %v336_v56, %v52_v22  ;;  %v115_v1 = vadd.f32 %v287_v60, %v103_v59 }
 0x135   :  { %v89_v61 = vmul.f32 %v338_v57, %v407_v15 }
 0x136   :  { %v104_v62 = vmul.f32 %v286_v55, %v92_v58 }
 0x137   :  { %v340_v63 = vpop.eup %339  ;;  %v101_v4 = vmul.f32 %v286_v55, %v89_v61 }
 0x138   :  { %v342_v0 = vpop.eup %341  ;;  %v116_v2 = vadd.f32 %v287_v60, %v104_v62  ;;  %v90_v3 = vmul.f32 %v340_v63, %v414_v24 }
 0x139   :  { %v93_v5 = vmul.f32 %v342_v0, %v53_v30  ;;  %v113_v9 = vadd.f32 %v287_v60, %v101_v4 }
 0x13a   :  { %v119_v6 = vpack.c.bf16 %v116_v2, %v115_v1  ;;  %v102_v7 = vmul.f32 %v286_v55, %v90_v3 }
 0x13b   :  { %v105_v8 = vmul.f32 %v286_v55, %v93_v5 }
 0x13c   :  { %318 = vmatmul.mubr.msk.bf16.vlgmr.msra.gmra.mxu1 %vm26_vm0, %v119_v6  ;;  %v114_v10 = vadd.f32 %v287_v60, %v102_v7 }
 0x13d   :  { %321 = vmatprep.mubr.msk.bf16.mxu1 %vm354_vm2, %v353_v35  ;;  %v117_v12 = vadd.f32 %v287_v60, %v105_v8 }
 0x13e   :  { %v118_v11 = vpack.c.bf16 %v114_v10, %v113_v9 }
 0x13f   :  { %v120_v13 = vpack.c.bf16 %v117_v12, %v117_v12 }
 0x140   :  { %314 = vmatmul.mubr.msk.bf16.vlgmr.msra.gmra.mxu0 %vm26_vm0, %v118_v11 }
 0x144   :  { %322 = vmatmul.mubr.msk.bf16.gmra.mxu1 %vm26_vm0, %v120_v13 }
 0x1fc   :  { %v195_v15 = vpop.f32.mrf.mxu1 }
 0x1fd   :  { %v196_v16 = vadd.f32 %v288_v14, %v195_v15 }
 0x1fe   :  { %v319_v17 = vpop.f32.mrf.mxu1 }
 0x1ff   :  { %v211_v18 = vmul.f32 %v196_v16, %v196_v16 }
 0x200   :  { %v187_v19 = vpop.f32.mrf.mxu0  ;;  %v198_v20 = vpop.f32.mrf.mxu1 }
 0x201   :  { %v216_v21 = vmul.f32 %v211_v18, %v196_v16  ;;  %v188_v22 = vadd.f32 %v288_v14, %v187_v19  ;;  %v199_v23 = vadd.f32 %v288_v14, %v198_v20 }
 0x202   :  { %v315_v24 = vpop.f32.mrf.mxu0  ;;  %v320_v25 = vpop.f32.mrf.mxu1 }
 0x203   :  { %v221_v26 = vmul.f32 0.044715, %v216_v21  ;;  %v209_v27 = vmul.f32 %v188_v22, %v188_v22  ;;  %v212_v28 = vmul.f32 %v199_v23, %v199_v23 }
 0x204   :  { %v190_v29 = vpop.f32.mrf.mxu0  ;;  %v203_v30 = vpop.f32.mrf.mxu1 }
 0x205   :  { %v226_v31 = vadd.f32 %v221_v26, %v196_v16  ;;  %v214_v32 = vmul.f32 %v209_v27, %v188_v22  ;;  %v217_v33 = vmul.f32 %v212_v28, %v199_v23  ;;  %v191_v34 = vadd.f32 %v288_v14, %v190_v29 }
 0x206   :  { %v204_v35 = vadd.f32 %v288_v14, %v203_v30  ;;  %v316_v36 = vpop.f32.mrf.mxu0  ;;  %v323_v37 = vpop.f32.mrf.mxu1 }
 0x207   :  { %v231_v38 = vmul.f32 0.7978846, %v226_v31  ;;  %v219_v39 = vmul.f32 0.044715, %v214_v32  ;;  %v222_v40 = vmul.f32 0.044715, %v217_v33  ;;  %v210_v41 = vmul.f32 %v191_v34, %v191_v34 }
 0x208   :  { %v213_v42 = vmul.f32 %v204_v35, %v204_v35  ;;  %v206_v43 = vpop.f32.mrf.mxu1 }
 0x209   :  { %343 = vtanh.f32 %v231_v38  ;;  %v224_v44 = vadd.f32 %v219_v39, %v188_v22  ;;  %v227_v45 = vadd.f32 %v222_v40, %v199_v23  ;;  %v215_v46 = vmul.f32 %v210_v41, %v191_v34 }
 0x20a   :  { %v218_v47 = vmul.f32 %v213_v42, %v204_v35  ;;  %v324_v48 = vpop.f32.mrf.mxu1 }
 0x20b   :  { %v229_v49 = vmul.f32 0.7978846, %v224_v44  ;;  %v232_v50 = vmul.f32 0.7978846, %v227_v45  ;;  %v220_v51 = vmul.f32 0.044715, %v215_v46 }
 0x20c   :  { %v223_v52 = vmul.f32 0.044715, %v218_v47 }
 0x20d   :  { %345 = vtanh.f32 %v229_v49  ;;  %v225_v53 = vadd.f32 %v220_v51, %v191_v34 }
 0x20e   :  { %347 = vtanh.f32 %v232_v50  ;;  %v228_v54 = vadd.f32 %v223_v52, %v204_v35 }
 0x20f   :  { %v230_v55 = vmul.f32 0.7978846, %v225_v53 }
 0x210   :  { %v233_v56 = vmul.f32 0.7978846, %v228_v54 }
 0x211   :  { %349 = vtanh.f32 %v230_v55 }
 0x212   :  { %351 = vtanh.f32 %v233_v56 }
 0x216   :  { %v344_v57 = vpop.eup %343 }
 0x217   :  { %v241_v58 = vadd.f32 1.0, %v344_v57 }
 0x219   :  { %v246_v59 = vmul.f32 0.5, %v241_v58 }
 0x21a   :  { %v346_v60 = vpop.eup %345 }
 0x21b   :  { %v348_v61 = vpop.eup %347  ;;  %v251_v62 = vmul.f32 %v246_v59, %v196_v16  ;;  %v239_v63 = vadd.f32 1.0, %v346_v60 }
 0x21c   :  { %v242_v0 = vadd.f32 1.0, %v348_v61 }
 0x21d   :  { %v301_v1 = vpack.c.bf16 %v251_v62, %v251_v62  ;;  %v244_v2 = vmul.f32 0.5, %v239_v63 }
 0x21e   :  { %v350_v3 = vpop.eup %349  ;;  %v247_v4 = vmul.f32 0.5, %v242_v0 }
 0x21f   :  { %v352_v5 = vpop.eup %351  ;;  %278 = vst.msk [vmem:[%s470_s5 + $0x8] sm:$0xf] %vm275_vm3, %v301_v1  ;;  %v249_v6 = vmul.f32 %v244_v2, %v188_v22  ;;  %v240_v7 = vadd.f32 1.0, %v350_v3 }
 0x220   :  { %v252_v8 = vmul.f32 %v247_v4, %v199_v23  ;;  %v243_v9 = vadd.f32 1.0, %v352_v5 }
 0x221   :  { %v299_v10 = vpack.c.bf16 %v249_v6, %v249_v6  ;;  %v245_v11 = vmul.f32 0.5, %v240_v7 }
 0x222   :  { %v302_v12 = vpack.c.bf16 %v252_v8, %v252_v8  ;;  %v248_v13 = vmul.f32 0.5, %v243_v9 }
 0x223   :  { %276 = vst.msk [vmem:[%s470_s5] sm:$0xf] %vm275_vm3, %v299_v10  ;;  %v250_v14 = vmul.f32 %v245_v11, %v191_v34 }
 0x224   :  { %279 = vst.msk [vmem:[%s470_s5 + $0xc] sm:$0xf] %vm275_vm3, %v302_v12  ;;  %v253_v15 = vmul.f32 %v248_v13, %v204_v35 }
 0x225   :  { %v300_v16 = vpack.c.bf16 %v250_v14, %v250_v14 }
 0x226   :  { %v303_v17 = vpack.c.bf16 %v253_v15, %v253_v15 }
 0x227   :  { %277 = vst.msk [vmem:[%s470_s5 + $0x4] sm:$0xf] %vm275_vm3, %v300_v16 }
 0x228   :  { %281 = vst.msk [vmem:[%s470_s5 + $0x10] sm:$0x1] %vm280_vm4, %v303_v17 }

// kernel: vit_forward.23
= control target key start
LH: loop header
LB: loop body
LE: loop exit
PB: predicated region body
PF: predicated region fallthrough
CT: control target
= control target key end

     0   :  { %vm23_vm0 = vcmask 254976   ;;  %s237_s0 = inlined_call_operand.vmem [shape: f32[2,32], index: 0, kind: input, shape index: {}]   ;;  %s238_s1 = inlined_call_operand.vmem [shape: f32[1,32], index: 1, kind: input, shape index: {}]   ;;  %s239_s2 = inlined_call_operand.vmem [shape: f32[1,32], index: 2, kind: input, shape index: {}]   ;;  %s240_s3 = inlined_call_operand.vmem [shape: bf16[32,128], index: 3, kind: input, shape index: {}]   ;;  %s241_s4 = inlined_call_operand.vmem [shape: f32[1,128], index: 4, kind: input, shape index: {}]   ;;  %s242_s5 = inlined_call_operand.hbm [shape: f32[2,128], index: 5, kind: output, shape index: {}]  }
   0x1   :  { %v22_v0 = vld [vmem:[%s237_s0] sm:$0x3] }
   0x2   :  { %v24_v1 = vsel %vm23_vm0, %v22_v0, 0.0 }
   0x3   :  { %25 = vadd.xlane.f32.xlu0 %v24_v1 }
   0x4   :  { %10 = vsyncpa [#allocation3], 0  ;;  %v157_v7 = vld [vmem:[%s240_s3 + $0x8] sm:$0xff]   ;;  %v183_v8 = vmov 0.0   ;;  %vm184_vm1 = vmmov 0   ;;  %v158_v9 = vld [vmem:[%s240_s3] sm:$0xff]  }
   0x5   :  { %146 = vmatprep.subr.bf16.mxu0 %v183_v8  ;;  %150 = vmatprep.mubr.msk.bf16.mxu0 %vm184_vm1, %v183_v8  ;;  %v137_v14 = vld [vmem:[%s238_s1] ss:$0 sm:$0xff]  ;;  %vm78_vm2 = vcmask 261120   ;;  %s185_s28 = smov [#allocation2]  }
   0x6   :  { %147 = vmatpush3.bf16.msra.mxu0 %v157_v7  ;;  %v138_v16 = vld [vmem:[%s239_s2] ss:$0 sm:$0xff]  ;;  %s129_s29 = sshll.u32 %s185_s28, 4  ;;  %s130_s29 = int_to_ptr.vmem [resolvable:$true] %s129_s29 }
   0x7   :  { %148 = vmatprep.subr.bf16.mxu0 %v183_v8  ;;  %v139_v20 = vld [vmem:[%s241_s4] ss:$0 sm:$0xff]  ;;  %s161_s1 = scalar_lea.vmem %s130_s29, 32  ;;  %p166_p1 = scmp.lt.s32.totalorder %s130_s29, %s130_s29 }
   0x8   :  { %p162_p0 = scmp.ne.s32.totalorder %s130_s29, %s161_s1  ;;  %p167_p2 = scmp.lt.s32.totalorder %s161_s1, %s161_s1 }
   0xa   :  { %149 = vmatpush3.bf16.msra.mxu0 %v158_v9  ;;  %p168_p3 = por %p167_p2, %p166_p1 }
   0xc   :  { %p169_p4 = pnand %p168_p3, %p162_p0 }
  0x8c   :  { %v26_v2 = vpop.xlane.xlu0 %25 }
  0x8d   :  { %v28_v3 = vmul.f32 0.03125, %v26_v2 }
  0x8f   :  { %v29_v4 = vsub.f32 %v22_v0, %v28_v3 }
  0x91   :  { %v30_v5 = vmul.f32 %v29_v4, %v29_v4 }
  0x93   :  { %v31_v6 = vsel %vm23_vm0, %v30_v5, 0.0 }
  0x94   :  { %32 = vadd.xlane.f32.xlu0 %v31_v6 }
 0x11d   :  { %v33_v10 = vpop.xlane.xlu0 %32 }
 0x11e   :  { %v34_v11 = vmul.f32 0.03125, %v33_v10 }
 0x120   :  { %v35_v12 = vadd.f32 1e-06, %v34_v11 }
 0x122   :  { %159 = vrsqrt.f32 %v35_v12 }
 0x12f   :  { %v160_v13 = vpop.eup %159 }
 0x130   :  { %v37_v15 = vmul.f32 %v160_v13, %v29_v4 }
 0x132   :  { %v45_v17 = vmul.f32 %v137_v14, %v37_v15 }
 0x134   :  { %v53_v18 = vadd.f32 %v138_v16, %v45_v17 }
 0x136   :  { %v54_v19 = vpack.c.bf16 %v53_v18, %v53_v18 }
 0x138   :  { %151 = vmatmul.mubr.msk.bf16.vlgmr.msra.gmra.mxu0 %vm78_vm2, %v54_v19 }
 0x1f8   :  { %v116_v21 = vpop.f32.mrf.mxu0 }
 0x1f9   :  { %v117_v22 = vadd.f32 %v139_v20, %v116_v21 }
 0x1fa   :  { %v152_v23 = vpop.f32.mrf.mxu0 }
 0x1fb   :  { %122 = vst [vmem:[#allocation2] sm:$0x3] %v117_v22 }
 0x1fc   :  { %v119_v24 = vpop.f32.mrf.mxu0 }
 0x1fd   :  { %172 = shalt.err (!%p169_p4)
}
 0x1fe   :  { %132 = dma.vmem_to_hbm [thread:$0]  %s130_s29, 32, %s242_s5, [#allocation3]   ;;  %v153_v25 = vpop.f32.mrf.mxu0 }
 0x1ff   :  { %181 = dma.done.wait [#allocation3], 32  }
 0x200   :  { %182 = vsyncadd [#allocation3], 4294967264 }
 0x201   :  { %136 = vsyncpa [#allocation3], 1 }

</bundles_post_ra>
